<compile_context>
chip_gen: v6e
topology: v6e:2x2x1
jax: 0.10.0
libtpu: 0.0.40
codegen_flags: <defaults>
</compile_context>

<pallas_src>
import numpy as np
import jax
import jax.numpy as jnp
from jax.experimental import pallas as pl
from jax.experimental.pallas import tpu as pltpu

# ------------------------- static model dimensions -------------------------
IN_FEATURES = 128
C1_IN, C1_OUT, K1 = 32, 32, 3          # deconv1
C2_IN, C2_OUT, K2 = 32, 3, 5           # deconv2
L0 = 64
FC_OUT = C1_IN * L0                    # 2048
STRIDE, PAD, OPAD2 = 2, 1, 1
L1 = (L0 - 1) * STRIDE - 2 * PAD + K1                  # 127
L2 = (L1 - 1) * STRIDE - 2 * PAD + K2 + OPAD2          # 256


# ----------------------------- kernel helpers -------------------------------
def _shift_next(v):
    # s[:, l] = v[:, l+1] (lane rotate by one; the wrapped-in column only ever
    # lands in a position that is masked afterwards).
    return jnp.concatenate([v[:, 1:], v[:, :1]], axis=1)


def _shift_prev(v):
    # s[:, l] = v[:, l-1] (lane rotate by one; the wrapped-in column is always
    # exactly zero because every 64-column block's last column of `bo` is zero).
    return jnp.concatenate([v[:, -1:], v[:, :-1]], axis=1)


# --------------------------------- kernel -----------------------------------
def fused_decoder_kernel(feat_ref, wfc_ref, bfc_ref, w1_ref, b1_ref,
                         w2_ref, b2_ref, o_ref):
    # feat_ref: (1, BB, 128)        wfc_ref: (128, 2048) bf16   bfc_ref: (1, 2048)
    # w1_ref:   (96, 32)  rows = [W1[:,:,1].T ; W1[:,:,2].T ; W1[:,:,0].T]
    # b1_ref:   (32, 1)
    # w2_ref:   (15, 32)  rows 3k..3k+2 = W2[:,:,k].T
    # b2_ref:   (3, 1)
    # o_ref:    (1, 4, 3, BB*64)  -- plane p holds output positions o = 4j + p
    BB = feat_ref.shape[1]
    N = BB * L0

    # ---------------- Linear(128,2048) + tanh ; Unflatten + tanh ----------------
    f = feat_ref[0].astype(jnp.bfloat16)                                   # (BB,128)
    h = jnp.dot(f, wfc_ref[...], preferred_element_type=jnp.float32)       # (BB,2048)
    h = jnp.tanh(jnp.tanh(h + bfc_ref[...]))         # tanh(fc) then tanh(unflatten)

    # Unflatten + move batch onto the lane axis: x[c, b*64 + i] = h[b, c*64 + i].
    # Built from static lane slices + concatenations only (no in-kernel reshape).
    per_b = [
        jnp.concatenate(
            [h[b:b + 1, c * L0:(c + 1) * L0] for c in range(C1_IN)], axis=0)
        for b in range(BB)
    ]
    x = per_b[0] if BB == 1 else jnp.concatenate(per_b, axis=-1)            # (32, N)

    # Column 63 of each 64-lane block == deconv1 output position 127, which does
    # not exist (L1 = 127); it must be exactly zero before feeding deconv2.
    lane = jax.lax.broadcasted_iota(jnp.int32, (1, N), 1)
    dead = (lane % L0) == (L0 - 1)

    # ------------- deconv1 (k=3, s=2, p=1) via even/odd output phases -----------
    #   x1[:, 2j]   = tanh(W1[:,:,1].T @ x[:, j]                      + b1)
    #   x1[:, 2j+1] = tanh(W1[:,:,2].T @ x[:, j] + W1[:,:,0].T @ x[:, j+1] + b1)
    u = jnp.dot(w1_ref[...], x, preferred_element_type=jnp.float32)        # (96, N)
    a = jnp.tanh(u[0:32] + b1_ref[...])                                    # even positions
    b_raw = u[32:64] + _shift_next(u[64:96]) + b1_ref[...]
    bo = jnp.where(dead, 0.0, jnp.tanh(b_raw))                             # odd positions

    # ---------- deconv2 (k=5, s=2, p=1, op=1) via 4 output phases ---------------
    # pa rows 3k..3k+2 = W2[:,:,k].T @ a ; pb likewise on bo.
    pa = jnp.dot(w2_ref[...], a, preferred_element_type=jnp.float32)       # (15, N)
    pb = jnp.dot(w2_ref[...], bo, preferred_element_type=jnp.float32)      # (15, N)

    pb_prev = _shift_prev(pb[9:15])                    # W2_3.T@bo_{j-1} ; W2_4.T@bo_{j-1}
    pa0_next = jnp.where(dead, 0.0, _shift_next(pa[0:3]))      # W2_0.T@a_{j+1}, edge masked

    b2v = b2_ref[...]
    # o = 4j     : tap1 on x1[2j]   + tap3 on x1[2j-1]
    o_ref[0, 0, :, :] = jnp.tanh(pa[3:6] + pb_prev[0:3] + b2v)
    # o = 4j + 1 : tap0 on x1[2j+1] + tap2 on x1[2j]   + tap4 on x1[2j-1]
    o_ref[0, 1, :, :] = jnp.tanh(pb[0:3] + pa[6:9] + pb_prev[3:6] + b2v)
    # o = 4j + 2 : tap1 on x1[2j+1] + tap3 on x1[2j]
    o_ref[0, 2, :, :] = jnp.tanh(pb[3:6] + pa[9:12] + b2v)
    # o = 4j + 3 : tap0 on x1[2j+2] + tap2 on x1[2j+1] + tap4 on x1[2j]
    o_ref[0, 3, :, :] = jnp.tanh(pa0_next + pb[6:9] + pa[12:15] + b2v)


# --------------------------------- wrapper ----------------------------------
def _pick_block_b(B):
    # >=2 grid steps whenever B >= 2 (v7x megacore); 8 rows per step once B is
    # large enough (lane-dense tiles, amortized per-step overhead).
    if B >= 16:
        return 8
    if B >= 2:
        return max(1, B // 2)
    return 1


def polar_decoder_forward(feature, params, block_b=None):
    wfc_t, bfc_row, wcat1, b1c, wcat2, b2c = params
    B = feature.shape[0]
    BB = block_b if block_b is not None else _pick_block_b(B)
    G = pl.cdiv(B, BB)
    Bp = G * BB
    if Bp != B:  # ragged last block -> zero-pad batch rows (sliced off at the end)
        feature = jnp.concatenate(
            [feature, jnp.zeros((Bp - B, IN_FEATURES), feature.dtype)], axis=0)
    feat_r = feature.reshape(G, BB, IN_FEATURES)
    N = BB * L0

    out4 = pl.pallas_call(
        fused_decoder_kernel,
        out_shape=jax.ShapeDtypeStruct((G, 4, C2_OUT, N), jnp.float32),
        grid=(G,),
        in_specs=[
            pl.BlockSpec((1, BB, IN_FEATURES), lambda g: (g, 0, 0)),
            pl.BlockSpec((IN_FEATURES, FC_OUT), lambda g: (0, 0)),
            pl.BlockSpec((1, FC_OUT), lambda g: (0, 0)),
            pl.BlockSpec((K1 * C1_OUT, C1_IN), lambda g: (0, 0)),
            pl.BlockSpec((C1_OUT, 1), lambda g: (0, 0)),
            pl.BlockSpec((K2 * C2_OUT, C2_IN), lambda g: (0, 0)),
            pl.BlockSpec((C2_OUT, 1), lambda g: (0, 0)),
        ],
        out_specs=pl.BlockSpec((1, 4, C2_OUT, N), lambda g: (g, 0, 0, 0)),
        compiler_params=pltpu.CompilerParams(dimension_semantics=("parallel",)),
    )(feat_r, wfc_t, bfc_row, wcat1, b1c, wcat2, b2c)

    # Phase planes -> interleaved (B, 3, 256).  Tiny wrapper-side layout plumbing.
    out = out4.reshape(G, 4, C2_OUT, BB, L0)
    out = jnp.transpose(out, (0, 3, 2, 4, 1)).reshape(Bp, C2_OUT, 4 * L0)
    return out[:B]


# --------------------- parameter setup (deterministic) ----------------------
def make_params():
    key = jax.random.PRNGKey(0)
    k_fc, k_w1, k_b1, k_w2, k_b2 = jax.random.split(key, 5)

    # Linear(128, 2048): orthogonal weight (gain=1), zero bias (orthogonal_init).
    Wfc = jax.nn.initializers.orthogonal()(k_fc, (FC_OUT, IN_FEATURES), jnp.float32)
    bfc = jnp.zeros((FC_OUT,), jnp.float32)

    # ConvTranspose1d weights, PyTorch layout (in_channels, out_channels, kernel).
    W1 = 0.1 * jax.random.normal(k_w1, (C1_IN, C1_OUT, K1), jnp.float32)
    b1 = 0.05 * jax.random.normal(k_b1, (C1_OUT,), jnp.float32)
    W2 = 0.1 * jax.random.normal(k_w2, (C2_IN, C2_OUT, K2), jnp.float32)
    b2 = 0.05 * jax.random.normal(k_b2, (C2_OUT,), jnp.float32)

    # ---- kernel-side parameter forms (pure glue, computed once) ----
    wfc_t = jnp.transpose(Wfc).astype(jnp.bfloat16)           # (128, 2048) bf16
    bfc_row = bfc.reshape(1, FC_OUT)                          # (1, 2048)

    w1t = jnp.transpose(W1, (2, 1, 0))                        # (K1, Cout, Cin)
    wcat1 = jnp.concatenate([w1t[1], w1t[2], w1t[0]], axis=0)  # (96, 32)
    w2t = jnp.transpose(W2, (2, 1, 0))                        # (K2, Cout, Cin)
    wcat2 = w2t.reshape(K2 * C2_OUT, C2_IN)                   # (15, 32)
    b1c = b1.reshape(C1_OUT, 1)
    b2c = b2.reshape(C2_OUT, 1)

    torch_like = (Wfc, bfc, W1, b1, W2, b2)
    kernel_params = (wfc_t, bfc_row, wcat1, b1c, wcat2, b2c)
    return torch_like, kernel_params


# ----------------------------- numpy reference -------------------------------
def convt1d_ref(x, w, b, stride, padding, output_padding):
    Bn, Cin, L = x.shape
    _, Cout, K = w.shape
    Lout = (L - 1) * stride - 2 * padding + K + output_padding
    out = np.tile(np.asarray(b, np.float64).reshape(1, Cout, 1), (Bn, 1, Lout))
    for i in range(L):
        for k in range(K):
            o = i * stride - padding + k
            if 0 <= o < Lout:
                out[:, :, o] += x[:, :, i] @ np.asarray(w, np.float64)[:, :, k]
    return out


def reference_forward(feature, torch_like):
    Wfc, bfc, W1, b1, W2, b2 = (np.asarray(p, np.float64) for p in torch_like)
    f = np.asarray(feature, np.float64)
    h = np.tanh(f @ Wfc.T + bfc)
    h = np.tanh(h.reshape(f.shape[0], C1_IN, L0))
    h = np.tanh(convt1d_ref(h, W1, b1, STRIDE, PAD, 0))
    h = np.tanh(convt1d_ref(h, W2, b2, STRIDE, PAD, OPAD2))
    return h


# --------------------------------- main --------------------------------------
if __name__ == "__main__":
    torch_like, kernel_params = make_params()
    fwd = jax.jit(polar_decoder_forward)

    # Primary example: B=2 (block_b=1, grid=(2,) -> both TensorCores on v7x).
    feature = jax.random.normal(jax.random.PRNGKey(0), (2, IN_FEATURES), jnp.float32)
    out = jax.block_until_ready(fwd(feature, kernel_params))
    assert out.shape == (2, C2_OUT, L2) and out.dtype == jnp.float32
    ref = reference_forward(feature, torch_like)
    err = float(np.max(np.abs(np.asarray(out, np.float64) - ref)))
    assert np.isfinite(err) and err < 5e-2, f"B=2 mismatch vs reference: {err}"

    # Secondary check: B=5 exercises batch-blocking (block_b=2, lane-dense tiles)
    # and the ragged-batch zero-padding path.
    feature5 = jax.random.normal(jax.random.PRNGKey(1), (5, IN_FEATURES), jnp.float32)
    out5 = jax.block_until_ready(fwd(feature5, kernel_params))
    assert out5.shape == (5, C2_OUT, L2)
    ref5 = reference_forward(feature5, torch_like)
    err5 = float(np.max(np.abs(np.asarray(out5, np.float64) - ref5)))
    assert np.isfinite(err5) and err5 < 5e-2, f"B=5 mismatch vs reference: {err5}"

    print("KERNEL_OK")
</pallas_src>

<mosaic_0001>
module attributes {stable_mosaic.version = 11 : i64} {
  func.func @fused_decoder_kernel(%arg0: i32, %arg1: memref<1x1x128xf32, #tpu.memory_space<vmem>>, %arg2: memref<128x2048xbf16, #tpu.memory_space<vmem>>, %arg3: memref<1x2048xf32, #tpu.memory_space<vmem>>, %arg4: memref<96x32xf32, #tpu.memory_space<vmem>>, %arg5: memref<32x1xf32, #tpu.memory_space<vmem>>, %arg6: memref<15x32xf32, #tpu.memory_space<vmem>>, %arg7: memref<3x1xf32, #tpu.memory_space<vmem>>, %arg8: memref<1x4x3x64xf32, #tpu.memory_space<vmem>>) attributes {dimension_semantics = [#tpu.dimension_semantics<parallel>], iteration_bounds = array<i64: 2>, scalar_prefetch = 0 : i64, scratch_operands = 0 : i64, tpu.core_type = #tpu.core_type<tc>, window_params = [{transform_indices = @transform_0, window_bounds = array<i64: 1, 1, 128>}, {pipeline_mode = #tpu.pipeline_mode<synchronous>, transform_indices = @transform_1, window_bounds = array<i64: 128, 2048>}, {pipeline_mode = #tpu.pipeline_mode<synchronous>, transform_indices = @transform_2, window_bounds = array<i64: 1, 2048>}, {pipeline_mode = #tpu.pipeline_mode<synchronous>, transform_indices = @transform_3, window_bounds = array<i64: 96, 32>}, {pipeline_mode = #tpu.pipeline_mode<synchronous>, transform_indices = @transform_4, window_bounds = array<i64: 32, 1>}, {pipeline_mode = #tpu.pipeline_mode<synchronous>, transform_indices = @transform_5, window_bounds = array<i64: 15, 32>}, {pipeline_mode = #tpu.pipeline_mode<synchronous>, transform_indices = @transform_6, window_bounds = array<i64: 3, 1>}, {transform_indices = @transform_7, window_bounds = array<i64: 1, 4, 3, 64>}]} {
    %c0 = arith.constant 0 : index
    %c0_0 = arith.constant 0 : index
    %c0_1 = arith.constant 0 : index
    %0 = vector.load %arg1[%c0, %c0_0, %c0_1] : memref<1x1x128xf32, #tpu.memory_space<vmem>>, vector<1x1x128xf32>
    %1 = vector.shape_cast %0 : vector<1x1x128xf32> to vector<1x128xf32>
    %2 = arith.truncf %1 : vector<1x128xf32> to vector<1x128xbf16>
    %c0_2 = arith.constant 0 : index
    %c0_3 = arith.constant 0 : index
    %3 = vector.load %arg2[%c0_2, %c0_3] : memref<128x2048xbf16, #tpu.memory_space<vmem>>, vector<128x2048xbf16>
    %cst = arith.constant dense<0.000000e+00> : vector<1x2048xf32>
    %4 = tpu.matmul %2, %3, %cst {dimension_numbers = #tpu.dot_dimension_numbers<[1], [0], [0], [1], [0, 0, 1, 1], [], []>} : vector<1x128xbf16>, vector<128x2048xbf16>, vector<1x2048xf32> -> vector<1x2048xf32>
    %c0_4 = arith.constant 0 : index
    %c0_5 = arith.constant 0 : index
    %5 = vector.load %arg3[%c0_4, %c0_5] : memref<1x2048xf32, #tpu.memory_space<vmem>>, vector<1x2048xf32>
    %6 = arith.addf %4, %5 : vector<1x2048xf32>
    %7 = math.tanh %6 : vector<1x2048xf32>
    %8 = math.tanh %7 : vector<1x2048xf32>
    %9 = vector.extract_strided_slice %8 {offsets = [0, 0], sizes = [1, 64], strides = [1, 1]} : vector<1x2048xf32> to vector<1x64xf32>
    %10 = vector.extract_strided_slice %8 {offsets = [0, 64], sizes = [1, 64], strides = [1, 1]} : vector<1x2048xf32> to vector<1x64xf32>
    %11 = vector.extract_strided_slice %8 {offsets = [0, 128], sizes = [1, 64], strides = [1, 1]} : vector<1x2048xf32> to vector<1x64xf32>
    %12 = vector.extract_strided_slice %8 {offsets = [0, 192], sizes = [1, 64], strides = [1, 1]} : vector<1x2048xf32> to vector<1x64xf32>
    %13 = vector.extract_strided_slice %8 {offsets = [0, 256], sizes = [1, 64], strides = [1, 1]} : vector<1x2048xf32> to vector<1x64xf32>
    %14 = vector.extract_strided_slice %8 {offsets = [0, 320], sizes = [1, 64], strides = [1, 1]} : vector<1x2048xf32> to vector<1x64xf32>
    %15 = vector.extract_strided_slice %8 {offsets = [0, 384], sizes = [1, 64], strides = [1, 1]} : vector<1x2048xf32> to vector<1x64xf32>
    %16 = vector.extract_strided_slice %8 {offsets = [0, 448], sizes = [1, 64], strides = [1, 1]} : vector<1x2048xf32> to vector<1x64xf32>
    %17 = vector.extract_strided_slice %8 {offsets = [0, 512], sizes = [1, 64], strides = [1, 1]} : vector<1x2048xf32> to vector<1x64xf32>
    %18 = vector.extract_strided_slice %8 {offsets = [0, 576], sizes = [1, 64], strides = [1, 1]} : vector<1x2048xf32> to vector<1x64xf32>
    %19 = vector.extract_strided_slice %8 {offsets = [0, 640], sizes = [1, 64], strides = [1, 1]} : vector<1x2048xf32> to vector<1x64xf32>
    %20 = vector.extract_strided_slice %8 {offsets = [0, 704], sizes = [1, 64], strides = [1, 1]} : vector<1x2048xf32> to vector<1x64xf32>
    %21 = vector.extract_strided_slice %8 {offsets = [0, 768], sizes = [1, 64], strides = [1, 1]} : vector<1x2048xf32> to vector<1x64xf32>
    %22 = vector.extract_strided_slice %8 {offsets = [0, 832], sizes = [1, 64], strides = [1, 1]} : vector<1x2048xf32> to vector<1x64xf32>
    %23 = vector.extract_strided_slice %8 {offsets = [0, 896], sizes = [1, 64], strides = [1, 1]} : vector<1x2048xf32> to vector<1x64xf32>
    %24 = vector.extract_strided_slice %8 {offsets = [0, 960], sizes = [1, 64], strides = [1, 1]} : vector<1x2048xf32> to vector<1x64xf32>
    %25 = vector.extract_strided_slice %8 {offsets = [0, 1024], sizes = [1, 64], strides = [1, 1]} : vector<1x2048xf32> to vector<1x64xf32>
    %26 = vector.extract_strided_slice %8 {offsets = [0, 1088], sizes = [1, 64], strides = [1, 1]} : vector<1x2048xf32> to vector<1x64xf32>
    %27 = vector.extract_strided_slice %8 {offsets = [0, 1152], sizes = [1, 64], strides = [1, 1]} : vector<1x2048xf32> to vector<1x64xf32>
    %28 = vector.extract_strided_slice %8 {offsets = [0, 1216], sizes = [1, 64], strides = [1, 1]} : vector<1x2048xf32> to vector<1x64xf32>
    %29 = vector.extract_strided_slice %8 {offsets = [0, 1280], sizes = [1, 64], strides = [1, 1]} : vector<1x2048xf32> to vector<1x64xf32>
    %30 = vector.extract_strided_slice %8 {offsets = [0, 1344], sizes = [1, 64], strides = [1, 1]} : vector<1x2048xf32> to vector<1x64xf32>
    %31 = vector.extract_strided_slice %8 {offsets = [0, 1408], sizes = [1, 64], strides = [1, 1]} : vector<1x2048xf32> to vector<1x64xf32>
    %32 = vector.extract_strided_slice %8 {offsets = [0, 1472], sizes = [1, 64], strides = [1, 1]} : vector<1x2048xf32> to vector<1x64xf32>
    %33 = vector.extract_strided_slice %8 {offsets = [0, 1536], sizes = [1, 64], strides = [1, 1]} : vector<1x2048xf32> to vector<1x64xf32>
    %34 = vector.extract_strided_slice %8 {offsets = [0, 1600], sizes = [1, 64], strides = [1, 1]} : vector<1x2048xf32> to vector<1x64xf32>
    %35 = vector.extract_strided_slice %8 {offsets = [0, 1664], sizes = [1, 64], strides = [1, 1]} : vector<1x2048xf32> to vector<1x64xf32>
    %36 = vector.extract_strided_slice %8 {offsets = [0, 1728], sizes = [1, 64], strides = [1, 1]} : vector<1x2048xf32> to vector<1x64xf32>
    %37 = vector.extract_strided_slice %8 {offsets = [0, 1792], sizes = [1, 64], strides = [1, 1]} : vector<1x2048xf32> to vector<1x64xf32>
    %38 = vector.extract_strided_slice %8 {offsets = [0, 1856], sizes = [1, 64], strides = [1, 1]} : vector<1x2048xf32> to vector<1x64xf32>
    %39 = vector.extract_strided_slice %8 {offsets = [0, 1920], sizes = [1, 64], strides = [1, 1]} : vector<1x2048xf32> to vector<1x64xf32>
    %40 = vector.extract_strided_slice %8 {offsets = [0, 1984], sizes = [1, 64], strides = [1, 1]} : vector<1x2048xf32> to vector<1x64xf32>
    %41 = tpu.concatenate %9, %10, %11, %12, %13, %14, %15, %16, %17, %18, %19, %20, %21, %22, %23, %24 in 0 : vector<1x64xf32>, vector<1x64xf32>, vector<1x64xf32>, vector<1x64xf32>, vector<1x64xf32>, vector<1x64xf32>, vector<1x64xf32>, vector<1x64xf32>, vector<1x64xf32>, vector<1x64xf32>, vector<1x64xf32>, vector<1x64xf32>, vector<1x64xf32>, vector<1x64xf32>, vector<1x64xf32>, vector<1x64xf32> -> vector<16x64xf32>
    %42 = tpu.concatenate %25, %26, %27, %28, %29, %30, %31, %32, %33, %34, %35, %36, %37, %38, %39, %40 in 0 : vector<1x64xf32>, vector<1x64xf32>, vector<1x64xf32>, vector<1x64xf32>, vector<1x64xf32>, vector<1x64xf32>, vector<1x64xf32>, vector<1x64xf32>, vector<1x64xf32>, vector<1x64xf32>, vector<1x64xf32>, vector<1x64xf32>, vector<1x64xf32>, vector<1x64xf32>, vector<1x64xf32>, vector<1x64xf32> -> vector<16x64xf32>
    %43 = tpu.concatenate %41, %42 in 0 : vector<16x64xf32>, vector<16x64xf32> -> vector<32x64xf32>
    %44 = tpu.iota {dimensions = array<i32: 1>} : vector<1x64xi32>
    %c64_i32 = arith.constant 64 : i32
    %c0_i32 = arith.constant 0 : i32
    %45 = arith.cmpi eq, %c64_i32, %c0_i32 : i32
    %c1_i32 = arith.constant 1 : i32
    %46 = arith.select %45, %c1_i32, %c64_i32 : i32
    %47 = vector.broadcast %46 : i32 to vector<1x64xi32>
    %48 = arith.remsi %44, %47 : vector<1x64xi32>
    %c0_i32_6 = arith.constant 0 : i32
    %49 = vector.broadcast %c0_i32_6 : i32 to vector<1x64xi32>
    %50 = arith.cmpi ne, %48, %49 : vector<1x64xi32>
    %c0_i32_7 = arith.constant 0 : i32
    %51 = vector.broadcast %c0_i32_7 : i32 to vector<1x64xi32>
    %52 = arith.cmpi slt, %48, %51 : vector<1x64xi32>
    %c0_i32_8 = arith.constant 0 : i32
    %53 = arith.cmpi slt, %46, %c0_i32_8 : i32
    %54 = vector.broadcast %53 : i1 to vector<1x64xi1>
    %55 = vector.broadcast %54 : vector<1x64xi1> to vector<1x64xi1>
    %56 = arith.xori %52, %55 : vector<1x64xi1>
    %57 = arith.andi %56, %50 : vector<1x64xi1>
    %58 = vector.broadcast %46 : i32 to vector<1x64xi32>
    %59 = arith.addi %48, %58 : vector<1x64xi32>
    %60 = arith.select %57, %59, %48 : vector<1x64xi1>, vector<1x64xi32>
    %c63_i32 = arith.constant 63 : i32
    %61 = vector.broadcast %c63_i32 : i32 to vector<1x64xi32>
    %62 = arith.cmpi eq, %60, %61 : vector<1x64xi32>
    %c0_9 = arith.constant 0 : index
    %c0_10 = arith.constant 0 : index
    %63 = vector.load %arg4[%c0_9, %c0_10] : memref<96x32xf32, #tpu.memory_space<vmem>>, vector<96x32xf32>
    %cst_11 = arith.constant dense<0.000000e+00> : vector<96x64xf32>
    %64 = tpu.matmul %63, %43, %cst_11 {dimension_numbers = #tpu.dot_dimension_numbers<[1], [0], [0], [1], [0, 0, 1, 1], [], []>} : vector<96x32xf32>, vector<32x64xf32>, vector<96x64xf32> -> vector<96x64xf32>
    %65 = vector.extract_strided_slice %64 {offsets = [0, 0], sizes = [32, 64], strides = [1, 1]} : vector<96x64xf32> to vector<32x64xf32>
    %c0_12 = arith.constant 0 : index
    %c0_13 = arith.constant 0 : index
    %66 = vector.load %arg5[%c0_12, %c0_13] : memref<32x1xf32, #tpu.memory_space<vmem>>, vector<32x1xf32>
    %67 = vector.broadcast %66 : vector<32x1xf32> to vector<32x64xf32>
    %68 = arith.addf %65, %67 : vector<32x64xf32>
    %69 = math.tanh %68 : vector<32x64xf32>
    %70 = vector.extract_strided_slice %64 {offsets = [32, 0], sizes = [32, 64], strides = [1, 1]} : vector<96x64xf32> to vector<32x64xf32>
    %71 = vector.extract_strided_slice %64 {offsets = [64, 0], sizes = [32, 64], strides = [1, 1]} : vector<96x64xf32> to vector<32x64xf32>
    %72 = vector.extract_strided_slice %71 {offsets = [0, 1], sizes = [32, 63], strides = [1, 1]} : vector<32x64xf32> to vector<32x63xf32>
    %73 = vector.extract_strided_slice %71 {offsets = [0, 0], sizes = [32, 1], strides = [1, 1]} : vector<32x64xf32> to vector<32x1xf32>
    %74 = tpu.concatenate %72, %73 in 1 : vector<32x63xf32>, vector<32x1xf32> -> vector<32x64xf32>
    %75 = arith.addf %70, %74 : vector<32x64xf32>
    %c0_14 = arith.constant 0 : index
    %c0_15 = arith.constant 0 : index
    %76 = vector.load %arg5[%c0_14, %c0_15] : memref<32x1xf32, #tpu.memory_space<vmem>>, vector<32x1xf32>
    %77 = vector.broadcast %76 : vector<32x1xf32> to vector<32x64xf32>
    %78 = arith.addf %75, %77 : vector<32x64xf32>
    %79 = math.tanh %78 : vector<32x64xf32>
    %cst_16 = arith.constant 0.000000e+00 : f32
    %80 = vector.shape_cast %62 : vector<1x64xi1> to vector<1x64xi1>
    %81 = vector.broadcast %80 : vector<1x64xi1> to vector<32x64xi1>
    %82 = vector.broadcast %cst_16 : f32 to vector<32x64xf32>
    %83 = arith.select %81, %82, %79 : vector<32x64xi1>, vector<32x64xf32>
    %c0_17 = arith.constant 0 : index
    %c0_18 = arith.constant 0 : index
    %84 = vector.load %arg6[%c0_17, %c0_18] : memref<15x32xf32, #tpu.memory_space<vmem>>, vector<15x32xf32>
    %cst_19 = arith.constant dense<0.000000e+00> : vector<15x64xf32>
    %85 = tpu.matmul %84, %69, %cst_19 {dimension_numbers = #tpu.dot_dimension_numbers<[1], [0], [0], [1], [0, 0, 1, 1], [], []>} : vector<15x32xf32>, vector<32x64xf32>, vector<15x64xf32> -> vector<15x64xf32>
    %c0_20 = arith.constant 0 : index
    %c0_21 = arith.constant 0 : index
    %86 = vector.load %arg6[%c0_20, %c0_21] : memref<15x32xf32, #tpu.memory_space<vmem>>, vector<15x32xf32>
    %cst_22 = arith.constant dense<0.000000e+00> : vector<15x64xf32>
    %87 = tpu.matmul %86, %83, %cst_22 {dimension_numbers = #tpu.dot_dimension_numbers<[1], [0], [0], [1], [0, 0, 1, 1], [], []>} : vector<15x32xf32>, vector<32x64xf32>, vector<15x64xf32> -> vector<15x64xf32>
    %88 = vector.extract_strided_slice %87 {offsets = [9, 0], sizes = [6, 64], strides = [1, 1]} : vector<15x64xf32> to vector<6x64xf32>
    %89 = vector.extract_strided_slice %88 {offsets = [0, 63], sizes = [6, 1], strides = [1, 1]} : vector<6x64xf32> to vector<6x1xf32>
    %90 = vector.extract_strided_slice %88 {offsets = [0, 0], sizes = [6, 63], strides = [1, 1]} : vector<6x64xf32> to vector<6x63xf32>
    %91 = tpu.concatenate %89, %90 in 1 : vector<6x1xf32>, vector<6x63xf32> -> vector<6x64xf32>
    %92 = vector.extract_strided_slice %85 {offsets = [0, 0], sizes = [3, 64], strides = [1, 1]} : vector<15x64xf32> to vector<3x64xf32>
    %93 = vector.extract_strided_slice %92 {offsets = [0, 1], sizes = [3, 63], strides = [1, 1]} : vector<3x64xf32> to vector<3x63xf32>
    %94 = vector.extract_strided_slice %92 {offsets = [0, 0], sizes = [3, 1], strides = [1, 1]} : vector<3x64xf32> to vector<3x1xf32>
    %95 = tpu.concatenate %93, %94 in 1 : vector<3x63xf32>, vector<3x1xf32> -> vector<3x64xf32>
    %cst_23 = arith.constant 0.000000e+00 : f32
    %96 = vector.shape_cast %62 : vector<1x64xi1> to vector<1x64xi1>
    %97 = vector.broadcast %96 : vector<1x64xi1> to vector<3x64xi1>
    %98 = vector.broadcast %cst_23 : f32 to vector<3x64xf32>
    %99 = arith.select %97, %98, %95 : vector<3x64xi1>, vector<3x64xf32>
    %c0_24 = arith.constant 0 : index
    %c0_25 = arith.constant 0 : index
    %100 = vector.load %arg7[%c0_24, %c0_25] : memref<3x1xf32, #tpu.memory_space<vmem>>, vector<3x1xf32>
    %101 = vector.extract_strided_slice %85 {offsets = [3, 0], sizes = [3, 64], strides = [1, 1]} : vector<15x64xf32> to vector<3x64xf32>
    %102 = vector.extract_strided_slice %91 {offsets = [0, 0], sizes = [3, 64], strides = [1, 1]} : vector<6x64xf32> to vector<3x64xf32>
    %103 = arith.addf %101, %102 : vector<3x64xf32>
    %104 = vector.broadcast %100 : vector<3x1xf32> to vector<3x64xf32>
    %105 = arith.addf %103, %104 : vector<3x64xf32>
    %106 = math.tanh %105 : vector<3x64xf32>
    %c0_26 = arith.constant 0 : index
    %c0_27 = arith.constant 0 : index
    %c0_28 = arith.constant 0 : index
    %c0_29 = arith.constant 0 : index
    %107 = vector.load %arg8[%c0_26, %c0_27, %c0_28, %c0_29] : memref<1x4x3x64xf32, #tpu.memory_space<vmem>>, vector<1x1x3x64xf32>
    %108 = vector.shape_cast %107 : vector<1x1x3x64xf32> to vector<3x64xf32>
    %109 = vector.shape_cast %106 : vector<3x64xf32> to vector<1x1x3x64xf32>
    tpu.vector_store %arg8[%c0_26, %c0_27, %c0_28, %c0_29], %109 {strides = array<i32>} : memref<1x4x3x64xf32, #tpu.memory_space<vmem>>, vector<1x1x3x64xf32>,
    %110 = vector.extract_strided_slice %87 {offsets = [0, 0], sizes = [3, 64], strides = [1, 1]} : vector<15x64xf32> to vector<3x64xf32>
    %111 = vector.extract_strided_slice %85 {offsets = [6, 0], sizes = [3, 64], strides = [1, 1]} : vector<15x64xf32> to vector<3x64xf32>
    %112 = arith.addf %110, %111 : vector<3x64xf32>
    %113 = vector.extract_strided_slice %91 {offsets = [3, 0], sizes = [3, 64], strides = [1, 1]} : vector<6x64xf32> to vector<3x64xf32>
    %114 = arith.addf %112, %113 : vector<3x64xf32>
    %115 = vector.broadcast %100 : vector<3x1xf32> to vector<3x64xf32>
    %116 = arith.addf %114, %115 : vector<3x64xf32>
    %117 = math.tanh %116 : vector<3x64xf32>
    %c0_30 = arith.constant 0 : index
    %c1 = arith.constant 1 : index
    %c0_31 = arith.constant 0 : index
    %c0_32 = arith.constant 0 : index
    %118 = vector.load %arg8[%c0_30, %c1, %c0_31, %c0_32] : memref<1x4x3x64xf32, #tpu.memory_space<vmem>>, vector<1x1x3x64xf32>
    %119 = vector.shape_cast %118 : vector<1x1x3x64xf32> to vector<3x64xf32>
    %120 = vector.shape_cast %117 : vector<3x64xf32> to vector<1x1x3x64xf32>
    tpu.vector_store %arg8[%c0_30, %c1, %c0_31, %c0_32], %120 {strides = array<i32>} : memref<1x4x3x64xf32, #tpu.memory_space<vmem>>, vector<1x1x3x64xf32>,
    %121 = vector.extract_strided_slice %87 {offsets = [3, 0], sizes = [3, 64], strides = [1, 1]} : vector<15x64xf32> to vector<3x64xf32>
    %122 = vector.extract_strided_slice %85 {offsets = [9, 0], sizes = [3, 64], strides = [1, 1]} : vector<15x64xf32> to vector<3x64xf32>
    %123 = arith.addf %121, %122 : vector<3x64xf32>
    %124 = vector.broadcast %100 : vector<3x1xf32> to vector<3x64xf32>
    %125 = arith.addf %123, %124 : vector<3x64xf32>
    %126 = math.tanh %125 : vector<3x64xf32>
    %c0_33 = arith.constant 0 : index
    %c2 = arith.constant 2 : index
    %c0_34 = arith.constant 0 : index
    %c0_35 = arith.constant 0 : index
    %127 = vector.load %arg8[%c0_33, %c2, %c0_34, %c0_35] : memref<1x4x3x64xf32, #tpu.memory_space<vmem>>, vector<1x1x3x64xf32>
    %128 = vector.shape_cast %127 : vector<1x1x3x64xf32> to vector<3x64xf32>
    %129 = vector.shape_cast %126 : vector<3x64xf32> to vector<1x1x3x64xf32>
    tpu.vector_store %arg8[%c0_33, %c2, %c0_34, %c0_35], %129 {strides = array<i32>} : memref<1x4x3x64xf32, #tpu.memory_space<vmem>>, vector<1x1x3x64xf32>,
    %130 = vector.extract_strided_slice %87 {offsets = [6, 0], sizes = [3, 64], strides = [1, 1]} : vector<15x64xf32> to vector<3x64xf32>
    %131 = arith.addf %99, %130 : vector<3x64xf32>
    %132 = vector.extract_strided_slice %85 {offsets = [12, 0], sizes = [3, 64], strides = [1, 1]} : vector<15x64xf32> to vector<3x64xf32>
    %133 = arith.addf %131, %132 : vector<3x64xf32>
    %134 = vector.broadcast %100 : vector<3x1xf32> to vector<3x64xf32>
    %135 = arith.addf %133, %134 : vector<3x64xf32>
    %136 = math.tanh %135 : vector<3x64xf32>
    %c0_36 = arith.constant 0 : index
    %c3 = arith.constant 3 : index
    %c0_37 = arith.constant 0 : index
    %c0_38 = arith.constant 0 : index
    %137 = vector.load %arg8[%c0_36, %c3, %c0_37, %c0_38] : memref<1x4x3x64xf32, #tpu.memory_space<vmem>>, vector<1x1x3x64xf32>
    %138 = vector.shape_cast %137 : vector<1x1x3x64xf32> to vector<3x64xf32>
    %139 = vector.shape_cast %136 : vector<3x64xf32> to vector<1x1x3x64xf32>
    tpu.vector_store %arg8[%c0_36, %c3, %c0_37, %c0_38], %139 {strides = array<i32>} : memref<1x4x3x64xf32, #tpu.memory_space<vmem>>, vector<1x1x3x64xf32>,
    return
  }
  func.func @transform_0(%arg0: i32) -> (i32, i32, i32) {
    %c0_i32 = arith.constant 0 : i32
    %c0_i32_0 = arith.constant 0 : i32
    %c0_i32_1 = arith.constant 0 : i32
    return %arg0, %c0_i32, %c0_i32_0 : i32, i32, i32
  }
  func.func @transform_1(%arg0: i32) -> (i32, i32) {
    %c0_i32 = arith.constant 0 : i32
    %c0_i32_0 = arith.constant 0 : i32
    %c0_i32_1 = arith.constant 0 : i32
    return %c0_i32, %c0_i32_0 : i32, i32
  }
  func.func @transform_2(%arg0: i32) -> (i32, i32) {
    %c0_i32 = arith.constant 0 : i32
    %c0_i32_0 = arith.constant 0 : i32
    %c0_i32_1 = arith.constant 0 : i32
    return %c0_i32, %c0_i32_0 : i32, i32
  }
  func.func @transform_3(%arg0: i32) -> (i32, i32) {
    %c0_i32 = arith.constant 0 : i32
    %c0_i32_0 = arith.constant 0 : i32
    %c0_i32_1 = arith.constant 0 : i32
    return %c0_i32, %c0_i32_0 : i32, i32
  }
  func.func @transform_4(%arg0: i32) -> (i32, i32) {
    %c0_i32 = arith.constant 0 : i32
    %c0_i32_0 = arith.constant 0 : i32
    %c0_i32_1 = arith.constant 0 : i32
    return %c0_i32, %c0_i32_0 : i32, i32
  }
  func.func @transform_5(%arg0: i32) -> (i32, i32) {
    %c0_i32 = arith.constant 0 : i32
    %c0_i32_0 = arith.constant 0 : i32
    %c0_i32_1 = arith.constant 0 : i32
    return %c0_i32, %c0_i32_0 : i32, i32
  }
  func.func @transform_6(%arg0: i32) -> (i32, i32) {
    %c0_i32 = arith.constant 0 : i32
    %c0_i32_0 = arith.constant 0 : i32
    %c0_i32_1 = arith.constant 0 : i32
    return %c0_i32, %c0_i32_0 : i32, i32
  }
  func.func @transform_7(%arg0: i32) -> (i32, i32, i32, i32) {
    %c0_i32 = arith.constant 0 : i32
    %c0_i32_0 = arith.constant 0 : i32
    %c0_i32_1 = arith.constant 0 : i32
    %c0_i32_2 = arith.constant 0 : i32
    return %arg0, %c0_i32, %c0_i32_0, %c0_i32_1 : i32, i32, i32, i32
  }
}

</mosaic_0001>

<bundles_post_ra>
// kernel: polar_decoder_forward.1
= control target key start
LH: loop header
LB: loop body
LE: loop exit
PB: predicated region body
PF: predicated region fallthrough
CT: control target
= control target key end

     0   :  { %12 = vsyncpa [#allocation3], 0  ;;  %s2650_s24 = smov 0   ;;  %s2979_s0 = inlined_call_operand.vmem [shape: f32[2,1,128], index: 0, kind: input, shape index: {}]   ;;  %s2980_s1 = inlined_call_operand.hbm [shape: bf16[128,2048], index: 1, kind: input, shape index: {}]   ;;  %s2981_s2 = inlined_call_operand.vmem [shape: f32[1,2048], index: 2, kind: input, shape index: {}]   ;;  %s2982_s3 = inlined_call_operand.vmem [shape: f32[96,32], index: 3, kind: input, shape index: {}]   ;;  %s2983_s4 = inlined_call_operand.vmem [shape: f32[32,1], index: 4, kind: input, shape index: {}]   ;;  %s2984_s5 = inlined_call_operand.vmem [shape: f32[15,32], index: 5, kind: input, shape index: {}]   ;;  %s2985_s6 = inlined_call_operand.vmem [shape: f32[3,1], index: 6, kind: input, shape index: {}]   ;;  %s2986_s7 = inlined_call_operand.vmem [shape: f32[2,4,3,64], index: 7, kind: output, shape index: {}]  }
   0x1 LB: > { %s2656_s25 = sadd.s32 4294967295, %s2599_s24   ;;  %p2205_p0 = scmp.ge.s32.totalorder %s2599_s24, 1  ;;  %s2599_s24 = sphi %s2650_s24, %s18_s24  }
   0x2   : > { %p201_p1 = scmp.lt.s32.totalorder %s2599_s24, 3  ;;  %s2601_s26 = smov [#allocation2]  }
   0x3   : > { %s213_s27 = sshll.u32 %s2601_s26, 4  ;;  %p2454_p3 = scmp.eq.s32.totalorder %s2656_s25, 0  ;;  %s214_s27 = int_to_ptr.vmem [resolvable:$true] %s213_s27 }
   0x4   : > { %p2660_p2 = pnand %p2205_p0, %p201_p1  ;;  %s2574_s29 = scalar_lea.vmem %s214_s27, 16384 }
   0x5   : > { %p2575_p7 = scmp.ne.s32.totalorder %s214_s27, %s2574_s29  ;;  %p2582_p10 = scmp.lt.s32.totalorder %s214_s27, %s214_s27 }
   0x6   : > { %p2450_p4 = pneg %p2660_p2  ;;  %p2583_p11 = scmp.lt.s32.totalorder %s2574_s29, %s2574_s29 }
   0x8   : > { %p2451_p5 = pnand %p2454_p3, %p2450_p4  ;;  %p2584_p12 = por %p2583_p11, %p2582_p10 }
   0xa   : > { %p2565_p6 = pneg %p2451_p5 }
   0xc   : > { %p2577_p8 = pnand %p2575_p7, %p2565_p6 }
   0xe   : > { %p2578_p9 = pneg %p2577_p8 }
  0x10   : > { %p2585_p13 = pnand %p2584_p12, %p2578_p9 }
  0x12   : > { %2588 = shalt.err (!%p2585_p13)
}
  0x13   : > { %s2602_s30 = smov 1024   ;;  %s2603_s8 = smov 64  }
  0x14   : > { %2453 = dma.hbm_to_vmem [thread:$0]  (!%p2451_p5), %s2980_s1, 16384, %s214_s27, [#allocation3], %s2602_s30, %s2602_s30, %s2603_s8  }
  0x15   : > { %250 = sbr.rel (%p2660_p2) target bundleno = 1208 (0x4b8), region = 48 }
  0x1a   : > { %2594 = dma.done.wait (%p2454_p3), [#allocation3], 16384  }
  0x1b   : > { %2596 = vsyncadd (%p2454_p3), [#allocation3], 4294950912  ;;  %v2604_v0 = vmov 0   ;;  %v403_v1 = vld [vmem:[#allocation2 + $0x380] sm:$0xff]  ;;  %v404_v3 = vld [vmem:[#allocation2 + $0x388] sm:$0xff]  ;;  %p280_p0 = scmp.lt.s32.totalorder %s2656_s25, 1 }
  0x1c   : > { %1175 = vmatprep.mubr.bf16.mxu0 %v2604_v0  ;;  %1216 = vmatprep.mubr.bf16.mxu1 %v2604_v0  ;;  %v411_v2 = vld [vmem:[#allocation2 + $0x3c0] sm:$0xff]  ;;  %v412_v5 = vld [vmem:[#allocation2 + $0x3c8] sm:$0xff]  ;;  %v405_v63 = vld [vmem:[#allocation2 + $0x390] sm:$0xff]  ;;  %s2605_s16 = smov 64   ;;  %vm1669_vm0 = vcmask 261120   ;;  %vm1555_vm1 = vcmask 1040384  }
  0x1d   : > { %2474 = vset.pattern.permute.xlu1 %v2604_v0  ;;  %2473 = vset.pattern.permute.xlu0 %v2604_v0  ;;  %v2325_v4 = vcombine.high %v403_v1, %v411_v2  ;;  %v2324_v6 = vcombine.low %v403_v1, %v411_v2  ;;  %v387_v7 = vld [vmem:[#allocation2 + $0x300] sm:$0xff]  ;;  %v2327_v9 = vcombine.high %v404_v3, %v412_v5  ;;  %v388_v12 = vld [vmem:[#allocation2 + $0x308] sm:$0xff]  ;;  %s2991_s25 = smov (!%p280_p0, %s2656_s25), 1  ;;  %v413_v1 = vld [vmem:[#allocation2 + $0x3d0] sm:$0xff]  ;;  %vm1559_vm2 = vcmask 1042432   ;;  %s2606_s11 = smov 63  }
  0x1e   : > { %v395_v8 = vld [vmem:[#allocation2 + $0x340] sm:$0xff]  ;;  %v2326_v10 = vcombine.low %v404_v3, %v412_v5  ;;  %v396_v13 = vld [vmem:[#allocation2 + $0x348] sm:$0xff]  ;;  %s282_s13 = scalar_lea.vmem %s2979_s0, %s2991_s25  ;;  %v406_v2 = vld [vmem:[#allocation2 + $0x398] sm:$0xff]  ;;  %vm1557_vm3 = vcmask 1041408   ;;  %vm1561_vm4 = vcmask 1043456   ;;  %vm1563_vm5 = vcmask 1044480  }
  0x1f   : > { %v2309_v11 = vcombine.high %v387_v7, %v395_v8  ;;  %v371_v14 = vld [vmem:[#allocation2 + $0x280] sm:$0xff]  ;;  %1143 = vmatprep.subr.bf16.mxu0 %v2325_v4  ;;  %v2311_v15 = vcombine.high %v388_v12, %v396_v13  ;;  %v372_v17 = vld [vmem:[#allocation2 + $0x288] sm:$0xff]  ;;  %1184 = vmatprep.subr.bf16.mxu1 %v2327_v9  ;;  %v2308_v19 = vcombine.low %v387_v7, %v395_v8  ;;  %v414_v3 = vld [vmem:[#allocation2 + $0x3d8] sm:$0xff]  ;;  %vm1565_vm6 = vcmask 1045504   ;;  %s2607_s12 = smov 127   ;;  %s2608_s17 = smov 1  }
  0x20   : > { %v379_v16 = vld [vmem:[#allocation2 + $0x2c0] sm:$0xff]  ;;  %v380_v18 = vld [vmem:[#allocation2 + $0x2c8] sm:$0xff]  ;;  %1144 = vmatpush1.bf16.msra.mxu0 %v2324_v6  ;;  %1185 = vmatpush1.bf16.msra.mxu1 %v2326_v10  ;;  %v2310_v20 = vcombine.low %v388_v12, %v396_v13  ;;  %v2329_v7 = vcombine.high %v405_v63, %v413_v1  ;;  %v2331_v8 = vcombine.high %v406_v2, %v414_v3  ;;  %v389_v9 = vld [vmem:[#allocation2 + $0x310] sm:$0xff]  ;;  %vm1567_vm7 = vcmask 1046528   ;;  %s2609_s18 = smov 65   ;;  %s2369_s19 = sshll.u32 %s2991_s25, 4 }
  0x21   : > { %1145 = vmatprep.subr.bf16.mxu0 %v2309_v11  ;;  %v2293_v21 = vcombine.high %v371_v14, %v379_v16  ;;  %1186 = vmatprep.subr.bf16.mxu1 %v2311_v15  ;;  %v2295_v22 = vcombine.high %v372_v17, %v380_v18  ;;  %v355_v23 = vld [vmem:[#allocation2 + $0x200] sm:$0xff]  ;;  %v356_v25 = vld [vmem:[#allocation2 + $0x208] sm:$0xff]  ;;  %v2292_v27 = vcombine.low %v371_v14, %v379_v16  ;;  %v397_v10 = vld [vmem:[#allocation2 + $0x350] sm:$0xff]  ;;  %vm1891_vm8 = vcmask 515072   ;;  %s287_s22 = scalar_lea.vmem %s2986_s7, %s2369_s19 }
  0x22   : > { %v363_v24 = vld [vmem:[#allocation2 + $0x240] sm:$0xff]  ;;  %v364_v26 = vld [vmem:[#allocation2 + $0x248] sm:$0xff]  ;;  %v2294_v28 = vcombine.low %v372_v17, %v380_v18  ;;  %v390_v12 = vld [vmem:[#allocation2 + $0x318] sm:$0xff]  ;;  %v2328_v14 = vcombine.low %v405_v63, %v413_v1  ;;  %v2330_v15 = vcombine.low %v406_v2, %v414_v3  ;;  %v2313_v16 = vcombine.high %v389_v9, %v397_v10 }
  0x23   : > { %v2277_v29 = vcombine.high %v355_v23, %v363_v24  ;;  %v2279_v30 = vcombine.high %v356_v25, %v364_v26  ;;  %v339_v31 = vld [vmem:[#allocation2 + $0x180] sm:$0xff]  ;;  %v340_v33 = vld [vmem:[#allocation2 + $0x188] sm:$0xff]  ;;  %v2276_v35 = vcombine.low %v355_v23, %v363_v24  ;;  %v2278_v36 = vcombine.low %v356_v25, %v364_v26  ;;  %v398_v13 = vld [vmem:[#allocation2 + $0x358] sm:$0xff] }
  0x24   : > { %1146 = vmatpush1.bf16.msra.mxu0 %v2308_v19  ;;  %1187 = vmatpush1.bf16.msra.mxu1 %v2310_v20  ;;  %v347_v32 = vld [vmem:[#allocation2 + $0x1c0] sm:$0xff]  ;;  %v348_v34 = vld [vmem:[#allocation2 + $0x1c8] sm:$0xff]  ;;  %v2315_v17 = vcombine.high %v390_v12, %v398_v13  ;;  %v373_v18 = vld [vmem:[#allocation2 + $0x290] sm:$0xff]  ;;  %v2314_v23 = vcombine.low %v390_v12, %v398_v13  ;;  %vm2104_vm11 = vcmask 521219   ;;  %vm2118_vm12 = vcmask 518144  }
  0x25   : > { %1147 = vmatprep.subr.bf16.mxu0 %v2293_v21  ;;  %1188 = vmatprep.subr.bf16.mxu1 %v2295_v22  ;;  %v2261_v37 = vcombine.high %v339_v31, %v347_v32  ;;  %v2263_v38 = vcombine.high %v340_v33, %v348_v34  ;;  %v323_v39 = vld [vmem:[#allocation2 + $0x100] sm:$0xff]  ;;  %v324_v41 = vld [vmem:[#allocation2 + $0x108] sm:$0xff]  ;;  %v2260_v43 = vcombine.low %v339_v31, %v347_v32  ;;  %v381_v19 = vld [vmem:[#allocation2 + $0x2d0] sm:$0xff]  ;;  %vm2079_vm13 = vcmask 7168  }
  0x26   : > { %v331_v40 = vld [vmem:[#allocation2 + $0x140] sm:$0xff]  ;;  %v332_v42 = vld [vmem:[#allocation2 + $0x148] sm:$0xff]  ;;  %v2262_v44 = vcombine.low %v340_v33, %v348_v34  ;;  %v374_v20 = vld [vmem:[#allocation2 + $0x298] sm:$0xff]  ;;  %v2312_v22 = vcombine.low %v389_v9, %v397_v10  ;;  %v2297_v24 = vcombine.high %v373_v18, %v381_v19 }
  0x27   : > { %v2245_v45 = vcombine.high %v323_v39, %v331_v40  ;;  %v2247_v46 = vcombine.high %v324_v41, %v332_v42  ;;  %v307_v47 = vld [vmem:[#allocation2 + $0x80] sm:$0xff]  ;;  %v308_v49 = vld [vmem:[#allocation2 + $0x88] sm:$0xff]  ;;  %v2244_v51 = vcombine.low %v323_v39, %v331_v40  ;;  %v2246_v52 = vcombine.low %v324_v41, %v332_v42  ;;  %v382_v21 = vld [vmem:[#allocation2 + $0x2d8] sm:$0xff] }
  0x28   : > { %1148 = vmatpush1.bf16.msra.mxu0 %v2292_v27  ;;  %1189 = vmatpush1.bf16.msra.mxu1 %v2294_v28  ;;  %v315_v48 = vld [vmem:[#allocation2 + $0xc0] sm:$0xff]  ;;  %v316_v50 = vld [vmem:[#allocation2 + $0xc8] sm:$0xff]  ;;  %v2299_v25 = vcombine.high %v374_v20, %v382_v21  ;;  %v357_v26 = vld [vmem:[#allocation2 + $0x210] sm:$0xff]  ;;  %v2298_v31 = vcombine.low %v374_v20, %v382_v21 }
  0x29   : > { %1149 = vmatprep.subr.bf16.mxu0 %v2277_v29  ;;  %1190 = vmatprep.subr.bf16.mxu1 %v2279_v30  ;;  %v2229_v53 = vcombine.high %v307_v47, %v315_v48  ;;  %v2231_v54 = vcombine.high %v308_v49, %v316_v50  ;;  %v291_v55 = vld [vmem:[#allocation2] sm:$0xff]  ;;  %v292_v57 = vld [vmem:[#allocation2 + $0x8] sm:$0xff]  ;;  %v2228_v59 = vcombine.low %v307_v47, %v315_v48  ;;  %v365_v27 = vld [vmem:[#allocation2 + $0x250] sm:$0xff] }
  0x2a   : > { %v299_v56 = vld [vmem:[#allocation2 + $0x40] sm:$0xff]  ;;  %v300_v58 = vld [vmem:[#allocation2 + $0x48] sm:$0xff]  ;;  %v2230_v60 = vcombine.low %v308_v49, %v316_v50  ;;  %v358_v28 = vld [vmem:[#allocation2 + $0x218] sm:$0xff]  ;;  %v2296_v30 = vcombine.low %v373_v18, %v381_v19  ;;  %v2281_v32 = vcombine.high %v357_v26, %v365_v27 }
  0x2b   : > { %v2213_v61 = vcombine.high %v291_v55, %v299_v56  ;;  %v2215_v62 = vcombine.high %v292_v57, %v300_v58  ;;  %v2212_v4 = vcombine.low %v291_v55, %v299_v56  ;;  %v289_v5 = vld [vmem:[%s282_s13] sm:$0x1]  ;;  %v2214_v6 = vcombine.low %v292_v57, %v300_v58  ;;  %v366_v29 = vld [vmem:[#allocation2 + $0x258] sm:$0xff]  ;;  %v341_v34 = vld [vmem:[#allocation2 + $0x190] sm:$0xff] }
  0x2c   : > { %1150 = vmatpush1.bf16.msra.mxu0 %v2276_v35  ;;  %1191 = vmatpush1.bf16.msra.mxu1 %v2278_v36  ;;  %v2690_v11 = vpack.c.bf16 %v289_v5, %v289_v5  ;;  %v2283_v33 = vcombine.high %v358_v28, %v366_v29  ;;  %v349_v35 = vld [vmem:[#allocation2 + $0x1d0] sm:$0xff]  ;;  %v342_v36 = vld [vmem:[#allocation2 + $0x198] sm:$0xff]  ;;  %v2282_v39 = vcombine.low %v358_v28, %v366_v29  ;;  %v407_v3 = vld [vmem:[#allocation2 + $0x3a0] sm:$0xff] }
  0x2d   : > { %1151 = vmatprep.subr.bf16.mxu0 %v2261_v37  ;;  %1192 = vmatprep.subr.bf16.mxu1 %v2263_v38  ;;  %v350_v37 = vld [vmem:[#allocation2 + $0x1d8] sm:$0xff]  ;;  %v2280_v38 = vcombine.low %v357_v26, %v365_v27  ;;  %v2265_v40 = vcombine.high %v341_v34, %v349_v35  ;;  %v325_v42 = vld [vmem:[#allocation2 + $0x110] sm:$0xff]  ;;  %v408_v5 = vld [vmem:[#allocation2 + $0x3a8] sm:$0xff] }
  0x2e   : > { %v2267_v41 = vcombine.high %v342_v36, %v350_v37  ;;  %v2266_v47 = vcombine.low %v342_v36, %v350_v37  ;;  %v309_v50 = vld [vmem:[#allocation2 + $0x90] sm:$0xff]  ;;  %v391_v12 = vld [vmem:[#allocation2 + $0x320] sm:$0xff] }
  0x2f   : > { %v293_v58 = vld [vmem:[#allocation2 + $0x10] sm:$0xff]  ;;  %v399_v13 = vld [vmem:[#allocation2 + $0x360] sm:$0xff] }
  0x30   : > { %1152 = vmatpush1.bf16.msra.mxu0 %v2260_v43  ;;  %1193 = vmatpush1.bf16.msra.mxu1 %v2262_v44  ;;  %v333_v43 = vld [vmem:[#allocation2 + $0x150] sm:$0xff]  ;;  %v326_v44 = vld [vmem:[#allocation2 + $0x118] sm:$0xff]  ;;  %v2317_v18 = vcombine.high %v391_v12, %v399_v13  ;;  %v375_v20 = vld [vmem:[#allocation2 + $0x2a0] sm:$0xff] }
  0x31   : > { %1153 = vmatprep.subr.bf16.mxu0 %v2245_v45  ;;  %1194 = vmatprep.subr.bf16.mxu1 %v2247_v46  ;;  %v334_v45 = vld [vmem:[#allocation2 + $0x158] sm:$0xff]  ;;  %v2264_v46 = vcombine.low %v341_v34, %v349_v35  ;;  %v2249_v48 = vcombine.high %v325_v42, %v333_v43  ;;  %v383_v21 = vld [vmem:[#allocation2 + $0x2e0] sm:$0xff] }
  0x32   : > { %v2251_v49 = vcombine.high %v326_v44, %v334_v45  ;;  %v2250_v55 = vcombine.low %v326_v44, %v334_v45  ;;  %v2301_v26 = vcombine.high %v375_v20, %v383_v21  ;;  %v359_v28 = vld [vmem:[#allocation2 + $0x220] sm:$0xff] }
  0x33   : > { %v367_v29 = vld [vmem:[#allocation2 + $0x260] sm:$0xff] }
  0x34   : > { %1154 = vmatpush1.bf16.msra.mxu0 %v2244_v51  ;;  %1195 = vmatpush1.bf16.msra.mxu1 %v2246_v52  ;;  %v317_v51 = vld [vmem:[#allocation2 + $0xd0] sm:$0xff]  ;;  %v310_v52 = vld [vmem:[#allocation2 + $0x98] sm:$0xff]  ;;  %v2285_v34 = vcombine.high %v359_v28, %v367_v29  ;;  %v343_v36 = vld [vmem:[#allocation2 + $0x1a0] sm:$0xff] }
  0x35   : > { %1155 = vmatprep.subr.bf16.mxu0 %v2229_v53  ;;  %1196 = vmatprep.subr.bf16.mxu1 %v2231_v54  ;;  %v318_v53 = vld [vmem:[#allocation2 + $0xd8] sm:$0xff]  ;;  %v2248_v54 = vcombine.low %v325_v42, %v333_v43  ;;  %v2233_v56 = vcombine.high %v309_v50, %v317_v51  ;;  %v351_v37 = vld [vmem:[#allocation2 + $0x1e0] sm:$0xff] }
  0x36   : > { %v2235_v57 = vcombine.high %v310_v52, %v318_v53  ;;  %v2234_v63 = vcombine.low %v310_v52, %v318_v53  ;;  %v2269_v42 = vcombine.high %v343_v36, %v351_v37  ;;  %v327_v44 = vld [vmem:[#allocation2 + $0x120] sm:$0xff] }
  0x37   : > { %v335_v45 = vld [vmem:[#allocation2 + $0x160] sm:$0xff] }
  0x38   : > { %1156 = vmatpush1.bf16.msra.mxu0 %v2228_v59  ;;  %1197 = vmatpush1.bf16.msra.mxu1 %v2230_v60  ;;  %v301_v59 = vld [vmem:[#allocation2 + $0x50] sm:$0xff]  ;;  %v294_v60 = vld [vmem:[#allocation2 + $0x18] sm:$0xff]  ;;  %v311_v52 = vld [vmem:[#allocation2 + $0xa0] sm:$0xff] }
  0x39   : > { %1157 = vmatprep.subr.bf16.mxu0 %v2213_v61  ;;  %1198 = vmatprep.subr.bf16.mxu1 %v2215_v62  ;;  %v302_v61 = vld [vmem:[#allocation2 + $0x58] sm:$0xff]  ;;  %v2232_v62 = vcombine.low %v309_v50, %v317_v51  ;;  %v2217_v1 = vcombine.high %v293_v58, %v301_v59  ;;  %v2253_v50 = vcombine.high %v327_v44, %v335_v45  ;;  %v319_v53 = vld [vmem:[#allocation2 + $0xe0] sm:$0xff] }
  0x3a   : > { %v2219_v2 = vcombine.high %v294_v60, %v302_v61 }
  0x3c   : > { %1158 = vmatpush1.bf16.msra.mxu0 %v2212_v4  ;;  %1199 = vmatpush1.bf16.msra.mxu1 %v2214_v6  ;;  %v415_v4 = vld [vmem:[#allocation2 + $0x3e0] sm:$0xff]  ;;  %v416_v6 = vld [vmem:[#allocation2 + $0x3e8] sm:$0xff] }
  0x3d   : > { %1225 = vmatprep.subr.bf16.mxu0 %v2329_v7  ;;  %1266 = vmatprep.subr.bf16.mxu1 %v2331_v8  ;;  %v2216_v7 = vcombine.low %v293_v58, %v301_v59  ;;  %v2218_v8 = vcombine.low %v294_v60, %v302_v61  ;;  %v2333_v9 = vcombine.high %v407_v3, %v415_v4  ;;  %v295_v60 = vld [vmem:[#allocation2 + $0x20] sm:$0xff] }
  0x3e   : > { %v2335_v10 = vcombine.high %v408_v5, %v416_v6  ;;  %v2237_v58 = vcombine.high %v311_v52, %v319_v53  ;;  %v303_v61 = vld [vmem:[#allocation2 + $0x60] sm:$0xff] }
  0x3f   : > { %1176 = vmatmul.mubr.bf16.vlgmr.msra.gmra.mxu0 %v2690_v11  ;;  %1217 = vmatmul.mubr.bf16.vlgmr.msra.gmra.mxu1 %v2690_v11 }
  0x40   : > { %1226 = vmatpush1.bf16.msra.mxu0 %v2328_v14  ;;  %1267 = vmatpush1.bf16.msra.mxu1 %v2330_v15  ;;  %v392_v14 = vld [vmem:[#allocation2 + $0x328] sm:$0xff] }
  0x41   : > { %1227 = vmatprep.subr.bf16.mxu0 %v2313_v16  ;;  %1268 = vmatprep.subr.bf16.mxu1 %v2315_v17  ;;  %v400_v15 = vld [vmem:[#allocation2 + $0x368] sm:$0xff]  ;;  %v2332_v16 = vcombine.low %v407_v3, %v415_v4  ;;  %v2334_v17 = vcombine.low %v408_v5, %v416_v6  ;;  %v2221_v3 = vcombine.high %v295_v60, %v303_v61  ;;  %v409_v5 = vld [vmem:[#allocation2 + $0x3b0] sm:$0xff] }
  0x42   : > { %1257 = vmatprep.mubr.bf16.mxu0 %v2604_v0  ;;  %1298 = vmatprep.mubr.bf16.mxu1 %v2604_v0  ;;  %v2319_v19 = vcombine.high %v392_v14, %v400_v15  ;;  %v417_v6 = vld [vmem:[#allocation2 + $0x3f0] sm:$0xff] }
  0x44   : > { %1228 = vmatpush1.bf16.msra.mxu0 %v2312_v22  ;;  %1269 = vmatpush1.bf16.msra.mxu1 %v2314_v23  ;;  %v376_v22 = vld [vmem:[#allocation2 + $0x2a8] sm:$0xff] }
  0x45   : > { %1229 = vmatprep.subr.bf16.mxu0 %v2297_v24  ;;  %1270 = vmatprep.subr.bf16.mxu1 %v2299_v25  ;;  %v384_v23 = vld [vmem:[#allocation2 + $0x2e8] sm:$0xff]  ;;  %v2316_v24 = vcombine.low %v391_v12, %v399_v13  ;;  %v2318_v25 = vcombine.low %v392_v14, %v400_v15  ;;  %v2337_v12 = vcombine.high %v409_v5, %v417_v6  ;;  %v393_v14 = vld [vmem:[#allocation2 + $0x330] sm:$0xff] }
  0x46   : > { %v2303_v27 = vcombine.high %v376_v22, %v384_v23  ;;  %v401_v15 = vld [vmem:[#allocation2 + $0x370] sm:$0xff] }
  0x48   : > { %1230 = vmatpush1.bf16.msra.mxu0 %v2296_v30  ;;  %1271 = vmatpush1.bf16.msra.mxu1 %v2298_v31  ;;  %v360_v30 = vld [vmem:[#allocation2 + $0x228] sm:$0xff] }
  0x49   : > { %1231 = vmatprep.subr.bf16.mxu0 %v2281_v32  ;;  %1272 = vmatprep.subr.bf16.mxu1 %v2283_v33  ;;  %v368_v31 = vld [vmem:[#allocation2 + $0x268] sm:$0xff]  ;;  %v2300_v32 = vcombine.low %v375_v20, %v383_v21  ;;  %v2302_v33 = vcombine.low %v376_v22, %v384_v23  ;;  %v2321_v20 = vcombine.high %v393_v14, %v401_v15  ;;  %v377_v22 = vld [vmem:[#allocation2 + $0x2b0] sm:$0xff] }
  0x4a   : > { %v2287_v35 = vcombine.high %v360_v30, %v368_v31  ;;  %v385_v23 = vld [vmem:[#allocation2 + $0x2f0] sm:$0xff] }
  0x4c   : > { %1232 = vmatpush1.bf16.msra.mxu0 %v2280_v38  ;;  %1273 = vmatpush1.bf16.msra.mxu1 %v2282_v39  ;;  %v344_v38 = vld [vmem:[#allocation2 + $0x1a8] sm:$0xff] }
  0x4d   : > { %1233 = vmatprep.subr.bf16.mxu0 %v2265_v40  ;;  %1274 = vmatprep.subr.bf16.mxu1 %v2267_v41  ;;  %v352_v39 = vld [vmem:[#allocation2 + $0x1e8] sm:$0xff]  ;;  %v2284_v40 = vcombine.low %v359_v28, %v367_v29  ;;  %v2286_v41 = vcombine.low %v360_v30, %v368_v31  ;;  %v2305_v28 = vcombine.high %v377_v22, %v385_v23  ;;  %v361_v30 = vld [vmem:[#allocation2 + $0x230] sm:$0xff] }
  0x4e   : > { %v2271_v43 = vcombine.high %v344_v38, %v352_v39  ;;  %v369_v31 = vld [vmem:[#allocation2 + $0x270] sm:$0xff] }
  0x50   : > { %1234 = vmatpush1.bf16.msra.mxu0 %v2264_v46  ;;  %1275 = vmatpush1.bf16.msra.mxu1 %v2266_v47  ;;  %v328_v46 = vld [vmem:[#allocation2 + $0x128] sm:$0xff] }
  0x51   : > { %1235 = vmatprep.subr.bf16.mxu0 %v2249_v48  ;;  %1276 = vmatprep.subr.bf16.mxu1 %v2251_v49  ;;  %v336_v47 = vld [vmem:[#allocation2 + $0x168] sm:$0xff]  ;;  %v2268_v48 = vcombine.low %v343_v36, %v351_v37  ;;  %v2270_v49 = vcombine.low %v344_v38, %v352_v39  ;;  %v2289_v36 = vcombine.high %v361_v30, %v369_v31  ;;  %v345_v38 = vld [vmem:[#allocation2 + $0x1b0] sm:$0xff] }
  0x52   : > { %v2255_v51 = vcombine.high %v328_v46, %v336_v47  ;;  %v353_v39 = vld [vmem:[#allocation2 + $0x1f0] sm:$0xff] }
  0x54   : > { %1236 = vmatpush1.bf16.msra.mxu0 %v2248_v54  ;;  %1277 = vmatpush1.bf16.msra.mxu1 %v2250_v55  ;;  %v312_v54 = vld [vmem:[#allocation2 + $0xa8] sm:$0xff] }
  0x55   : > { %1237 = vmatprep.subr.bf16.mxu0 %v2233_v56  ;;  %1278 = vmatprep.subr.bf16.mxu1 %v2235_v57  ;;  %v320_v55 = vld [vmem:[#allocation2 + $0xe8] sm:$0xff]  ;;  %v2252_v56 = vcombine.low %v327_v44, %v335_v45  ;;  %v2254_v57 = vcombine.low %v328_v46, %v336_v47  ;;  %v2273_v44 = vcombine.high %v345_v38, %v353_v39  ;;  %v329_v45 = vld [vmem:[#allocation2 + $0x130] sm:$0xff]  ;;  %v330_v47 = vld [vmem:[#allocation2 + $0x138] sm:$0xff] }
  0x56   : > { %v2239_v59 = vcombine.high %v312_v54, %v320_v55  ;;  %v337_v46 = vld [vmem:[#allocation2 + $0x170] sm:$0xff] }
  0x58   : > { %1238 = vmatpush1.bf16.msra.mxu0 %v2232_v62  ;;  %1279 = vmatpush1.bf16.msra.mxu1 %v2234_v63  ;;  %v296_v62 = vld [vmem:[#allocation2 + $0x28] sm:$0xff] }
  0x59   : > { %1239 = vmatprep.subr.bf16.mxu0 %v2217_v1  ;;  %1280 = vmatprep.subr.bf16.mxu1 %v2219_v2  ;;  %v304_v63 = vld [vmem:[#allocation2 + $0x68] sm:$0xff]  ;;  %v2236_v1 = vcombine.low %v311_v52, %v319_v53  ;;  %v2238_v2 = vcombine.low %v312_v54, %v320_v55  ;;  %v313_v53 = vld [vmem:[#allocation2 + $0xb0] sm:$0xff]  ;;  %v314_v55 = vld [vmem:[#allocation2 + $0xb8] sm:$0xff] }
  0x5a   : > { %v2223_v4 = vcombine.high %v296_v62, %v304_v63  ;;  %v321_v54 = vld [vmem:[#allocation2 + $0xf0] sm:$0xff] }
  0x5c   : > { %1240 = vmatpush1.bf16.msra.mxu0 %v2216_v7  ;;  %1281 = vmatpush1.bf16.msra.mxu1 %v2218_v8  ;;  %v410_v7 = vld [vmem:[#allocation2 + $0x3b8] sm:$0xff] }
  0x5d   : > { %1307 = vmatprep.subr.bf16.mxu0 %v2333_v9  ;;  %1348 = vmatprep.subr.bf16.mxu1 %v2335_v10  ;;  %v418_v8 = vld [vmem:[#allocation2 + $0x3f8] sm:$0xff]  ;;  %v2220_v9 = vcombine.low %v295_v60, %v303_v61  ;;  %v2222_v10 = vcombine.low %v296_v62, %v304_v63  ;;  %v297_v61 = vld [vmem:[#allocation2 + $0x30] sm:$0xff] }
  0x5e   : > { %v2339_v13 = vcombine.high %v410_v7, %v418_v8  ;;  %v305_v62 = vld [vmem:[#allocation2 + $0x70] sm:$0xff]  ;;  %v298_v63 = vld [vmem:[#allocation2 + $0x38] sm:$0xff] }
  0x5f   : > { %1258 = vmatmul.mubr.bf16.vlgmr.msra.gmra.mxu0 %v2690_v11  ;;  %1299 = vmatmul.mubr.bf16.vlgmr.msra.gmra.mxu1 %v2690_v11 }
  0x60   : > { %1308 = vmatpush1.bf16.msra.mxu0 %v2332_v16  ;;  %1349 = vmatpush1.bf16.msra.mxu1 %v2334_v17  ;;  %v394_v16 = vld [vmem:[#allocation2 + $0x338] sm:$0xff] }
  0x61   : > { %1309 = vmatprep.subr.bf16.mxu0 %v2317_v18  ;;  %1350 = vmatprep.subr.bf16.mxu1 %v2319_v19  ;;  %v402_v17 = vld [vmem:[#allocation2 + $0x378] sm:$0xff]  ;;  %v2336_v18 = vcombine.low %v409_v5, %v417_v6  ;;  %v2338_v19 = vcombine.low %v410_v7, %v418_v8  ;;  %v2224_v6 = vcombine.low %v297_v61, %v305_v62  ;;  %v1063_v8 = vlaneseq }
  0x62   : > { %1339 = vmatprep.mubr.bf16.mxu0 %v2604_v0  ;;  %1380 = vmatprep.mubr.bf16.mxu1 %v2604_v0  ;;  %v2323_v21 = vcombine.high %v394_v16, %v402_v17 }
  0x64   : > { %1310 = vmatpush1.bf16.msra.mxu0 %v2316_v24  ;;  %1351 = vmatpush1.bf16.msra.mxu1 %v2318_v25  ;;  %v378_v24 = vld [vmem:[#allocation2 + $0x2b8] sm:$0xff] }
  0x65   : > { %1311 = vmatprep.subr.bf16.mxu0 %v2301_v26  ;;  %1352 = vmatprep.subr.bf16.mxu1 %v2303_v27  ;;  %v386_v25 = vld [vmem:[#allocation2 + $0x2f8] sm:$0xff]  ;;  %v2320_v26 = vcombine.low %v393_v14, %v401_v15  ;;  %v2322_v27 = vcombine.low %v394_v16, %v402_v17 }
  0x66   : > { %v2307_v29 = vcombine.high %v378_v24, %v386_v25 }
  0x68   : > { %1312 = vmatpush1.bf16.msra.mxu0 %v2300_v32  ;;  %1353 = vmatpush1.bf16.msra.mxu1 %v2302_v33  ;;  %v362_v32 = vld [vmem:[#allocation2 + $0x238] sm:$0xff] }
  0x69   : > { %1313 = vmatprep.subr.bf16.mxu0 %v2285_v34  ;;  %1354 = vmatprep.subr.bf16.mxu1 %v2287_v35  ;;  %v370_v33 = vld [vmem:[#allocation2 + $0x278] sm:$0xff]  ;;  %v2304_v34 = vcombine.low %v377_v22, %v385_v23  ;;  %v2306_v35 = vcombine.low %v378_v24, %v386_v25 }
  0x6a   : > { %v2291_v37 = vcombine.high %v362_v32, %v370_v33 }
  0x6c   : > { %1314 = vmatpush1.bf16.msra.mxu0 %v2284_v40  ;;  %1355 = vmatpush1.bf16.msra.mxu1 %v2286_v41  ;;  %v346_v40 = vld [vmem:[#allocation2 + $0x1b8] sm:$0xff] }
  0x6d   : > { %1315 = vmatprep.subr.bf16.mxu0 %v2269_v42  ;;  %1356 = vmatprep.subr.bf16.mxu1 %v2271_v43  ;;  %v354_v41 = vld [vmem:[#allocation2 + $0x1f8] sm:$0xff]  ;;  %v2288_v42 = vcombine.low %v361_v30, %v369_v31  ;;  %v2290_v43 = vcombine.low %v362_v32, %v370_v33 }
  0x70   : > { %1316 = vmatpush1.bf16.msra.mxu0 %v2268_v48  ;;  %1357 = vmatpush1.bf16.msra.mxu1 %v2270_v49  ;;  %v338_v48 = vld [vmem:[#allocation2 + $0x178] sm:$0xff]  ;;  %v2272_v49 = vcombine.low %v345_v38, %v353_v39 }
  0x71   : > { %1317 = vmatprep.subr.bf16.mxu0 %v2253_v50  ;;  %1358 = vmatprep.subr.bf16.mxu1 %v2255_v51  ;;  %v2274_v50 = vcombine.low %v346_v40, %v354_v41  ;;  %v2257_v51 = vcombine.high %v329_v45, %v337_v46  ;;  %v2259_v52 = vcombine.high %v330_v47, %v338_v48 }
  0x74   : > { %1318 = vmatpush1.bf16.msra.mxu0 %v2252_v56  ;;  %1359 = vmatpush1.bf16.msra.mxu1 %v2254_v57  ;;  %v322_v56 = vld [vmem:[#allocation2 + $0xf8] sm:$0xff]  ;;  %v2256_v57 = vcombine.low %v329_v45, %v337_v46 }
  0x75   : > { %1319 = vmatprep.subr.bf16.mxu0 %v2237_v58  ;;  %1360 = vmatprep.subr.bf16.mxu1 %v2239_v59  ;;  %v2258_v58 = vcombine.low %v330_v47, %v338_v48  ;;  %v2241_v59 = vcombine.high %v313_v53, %v321_v54  ;;  %v2243_v60 = vcombine.high %v314_v55, %v322_v56 }
  0x78   : > { %1320 = vmatpush1.bf16.msra.mxu0 %v2236_v1  ;;  %1361 = vmatpush1.bf16.msra.mxu1 %v2238_v2  ;;  %v306_v1 = vld [vmem:[#allocation2 + $0x78] sm:$0xff]  ;;  %v2240_v2 = vcombine.low %v313_v53, %v321_v54 }
  0x79   : > { %1321 = vmatprep.subr.bf16.mxu0 %v2221_v3  ;;  %1362 = vmatprep.subr.bf16.mxu1 %v2223_v4  ;;  %v2242_v3 = vcombine.low %v314_v55, %v322_v56  ;;  %v2225_v4 = vcombine.high %v297_v61, %v305_v62  ;;  %v2227_v5 = vcombine.high %v298_v63, %v306_v1 }
  0x7a   : > { %v2226_v7 = vcombine.low %v298_v63, %v306_v1 }
  0x7c   : > { %1322 = vmatpush1.bf16.msra.mxu0 %v2220_v9  ;;  %1363 = vmatpush1.bf16.msra.mxu1 %v2222_v10  ;;  %v2707_v9 = vshrl.u32 %v1063_v8, 7 }
  0x7d   : > { %1389 = vmatprep.subr.bf16.mxu0 %v2337_v12  ;;  %1430 = vmatprep.subr.bf16.mxu1 %v2339_v13  ;;  %v2713_v12 = vld [vmem:[%s2981_s2] sm:$0xff] }
  0x7e   : > { %v1065_v10 = vsub.s32 0, %v2707_v9  ;;  %v1081_v23 = vsub.s32 4, %v2707_v9  ;;  %v1089_v24 = vsub.s32 6, %v2707_v9  ;;  %v1085_v25 = vsub.s32 5, %v2707_v9 }
  0x7f   : > { %1340 = vmatmul.mubr.bf16.vlgmr.msra.gmra.mxu0 %v2690_v11  ;;  %1381 = vmatmul.mubr.bf16.vlgmr.msra.gmra.mxu1 %v2690_v11  ;;  %v1073_v45 = vsub.s32 2, %v2707_v9  ;;  %v1069_v46 = vsub.s32 1, %v2707_v9 }
  0x80   : > { %1390 = vmatpush1.bf16.msra.mxu0 %v2336_v18  ;;  %1431 = vmatpush1.bf16.msra.mxu1 %v2338_v19  ;;  %v1066_v13 = vrot.slane %v2713_v12, %v1065_v10  ;;  %v1086_v30 = vrot.slane %v2713_v12, %v1085_v25 }
  0x81   : > { %1391 = vmatprep.subr.bf16.mxu0 %v2321_v20  ;;  %1432 = vmatprep.subr.bf16.mxu1 %v2323_v21 }
  0x82   : > { %1421 = vmatprep.mubr.bf16.mxu0 %v2604_v0  ;;  %1462 = vmatprep.mubr.bf16.mxu1 %v2604_v0  ;;  %v2275_v0 = vcombine.high %v346_v40, %v354_v41 }
  0x84   : > { %1392 = vmatpush1.bf16.msra.mxu0 %v2320_v26  ;;  %1433 = vmatpush1.bf16.msra.mxu1 %v2322_v27  ;;  %v1082_v26 = vrot.slane %v2713_v12, %v1081_v23 }
  0x85   : > { %1393 = vmatprep.subr.bf16.mxu0 %v2305_v28  ;;  %1434 = vmatprep.subr.bf16.mxu1 %v2307_v29  ;;  %v1090_v28 = vrot.slane %v2713_v12, %v1089_v24 }
  0x88   : > { %1394 = vmatpush1.bf16.msra.mxu0 %v2304_v34  ;;  %1435 = vmatpush1.bf16.msra.mxu1 %v2306_v35 }
  0x89   : > { %1395 = vmatprep.subr.bf16.mxu0 %v2289_v36  ;;  %1436 = vmatprep.subr.bf16.mxu1 %v2291_v37 }
  0x8c   : > { %1396 = vmatpush1.bf16.msra.mxu0 %v2288_v42  ;;  %1437 = vmatpush1.bf16.msra.mxu1 %v2290_v43 }
  0x8d   : > { %1397 = vmatprep.subr.bf16.mxu0 %v2273_v44  ;;  %1438 = vmatprep.subr.bf16.mxu1 %v2275_v0  ;;  %v420_v0 = vld [vmem:[%s2981_s2 + $0x8] sm:$0xff] }
  0x8e   : > { %v1098_v47 = vrot.slane %v420_v0, %v1065_v10  ;;  %v1077_v10 = vsub.s32 3, %v2707_v9 }
  0x90   : > { %1398 = vmatpush1.bf16.msra.mxu0 %v2272_v49  ;;  %1439 = vmatpush1.bf16.msra.mxu1 %v2274_v50  ;;  %v1106_v49 = vrot.slane %v420_v0, %v1073_v45 }
  0x91   : > { %1399 = vmatprep.subr.bf16.mxu0 %v2257_v51  ;;  %1440 = vmatprep.subr.bf16.mxu1 %v2259_v52  ;;  %v1102_v51 = vrot.slane %v420_v0, %v1069_v46 }
  0x94   : > { %1400 = vmatpush1.bf16.msra.mxu0 %v2256_v57  ;;  %1441 = vmatpush1.bf16.msra.mxu1 %v2258_v58 }
  0x95   : > { %1401 = vmatprep.subr.bf16.mxu0 %v2241_v59  ;;  %1442 = vmatprep.subr.bf16.mxu1 %v2243_v60 }
  0x98   : > { %1402 = vmatpush1.bf16.msra.mxu0 %v2240_v2  ;;  %1443 = vmatpush1.bf16.msra.mxu1 %v2242_v3 }
  0x99   : > { %1403 = vmatprep.subr.bf16.mxu0 %v2225_v4  ;;  %1444 = vmatprep.subr.bf16.mxu1 %v2227_v5 }
  0x9c   : > { %1404 = vmatpush1.bf16.msra.mxu0 %v2224_v6  ;;  %1445 = vmatpush1.bf16.msra.mxu1 %v2226_v7  ;;  %v1070_v7 = vrot.slane %v2713_v12, %v1069_v46 }
  0x9f   : > { %1422 = vmatmul.mubr.bf16.vlgmr.msra.gmra.mxu0 %v2690_v11  ;;  %1463 = vmatmul.mubr.bf16.vlgmr.msra.gmra.mxu1 %v2690_v11 }
  0xff   : > { %v1177_v14 = vpop.f32.mrf.mxu0  ;;  %v2716_v16 = vpop.f32.mrf.mxu1 }
 0x100   : > { %v1178_v15 = vadd.f32 %v1177_v14, %v1066_v13  ;;  %v1114_v13 = vrot.slane %v420_v0, %v1081_v23 }
 0x101   : > { %v2718_v17 = vpop.f32.mrf.mxu0  ;;  %v2720_v11 = vpop.f32.mrf.mxu1 }
 0x102   : > { %2475 = vtanh.f32 %v1178_v15  ;;  %v1180_v15 = vadd.f32 %v2718_v17, %v1070_v7 }
 0x103   : > { %v1181_v18 = vpop.f32.mrf.mxu0  ;;  %v1222_v19 = vpop.f32.mrf.mxu1 }
 0x104   : > { %v1093_v18 = vsub.s32 7, %v2707_v9  ;;  %v1122_v19 = vrot.slane %v420_v0, %v1089_v24 }
 0x105   : > { %v1182_v20 = vpop.f32.mrf.mxu0  ;;  %v1223_v21 = vpop.f32.mrf.mxu1 }
 0x106   : > { %v1110_v20 = vrot.slane %v420_v0, %v1077_v10  ;;  %v1094_v17 = vrot.slane %v2713_v12, %v1093_v18 }
 0x10f   : > { %v2476_v22 = vpop.eup %2475 }
 0x110   : > { %2477 = vtanh.f32 %v2476_v22  ;;  %v1118_v22 = vrot.slane %v420_v0, %v1085_v25 }
 0x11d   : > { %v2728_v27 = vpop.eup %2477 }
 0x11e   : > { %v1504_v29 = vrot.slane %v2728_v27, 7 }
 0x11f   : > { %v1259_v31 = vpop.f32.mrf.mxu0  ;;  %v1300_v33 = vpop.f32.mrf.mxu1 }
 0x120   : > { %v1260_v32 = vadd.f32 %v1259_v31, %v1082_v26  ;;  %1505 = vrot.lane.b32.xlu0 %v1504_v29, %s2605_s16  ;;  %v1301_v35 = vadd.f32 %v1300_v33, %v1090_v28  ;;  %v1126_v29 = vrot.slane %v420_v0, %v1093_v18  ;;  %v1078_v0 = vrot.slane %v2713_v12, %v1077_v10  ;;  %v1834_v18 = vld [vmem:[%s2983_s4 + $0x18] sm:$0xff] }
 0x121   : > { %v1261_v34 = vpop.f32.mrf.mxu0  ;;  %v2738_v37 = vpop.f32.mrf.mxu1 }
 0x122   : > { %2479 = vtanh.f32 %v1260_v32  ;;  %v1262_v36 = vadd.f32 %v1261_v34, %v1086_v30 }
 0x123   : > { %v1263_v38 = vpop.f32.mrf.mxu0  ;;  %v1304_v39 = vpop.f32.mrf.mxu1 }
 0x124   : > { %2481 = vtanh.f32 %v1262_v36 }
 0x125   : > { %v1264_v40 = vpop.f32.mrf.mxu0  ;;  %2483 = vtanh.f32 %v1301_v35  ;;  %v1305_v41 = vpop.f32.mrf.mxu1  ;;  %v1074_v35 = vrot.slane %v2713_v12, %v1073_v45  ;;  %v1221_v45 = vadd.f32 %v2720_v11, %v1078_v0 }
 0x126   : > { %v1303_v41 = vadd.f32 %v2738_v37, %v1094_v17 }
 0x12f   : > { %v2480_v42 = vpop.eup %2479 }
 0x130   : > { %2485 = vtanh.f32 %v2480_v42 }
 0x131   : > { %v2482_v43 = vpop.eup %2481 }
 0x132   : > { %2487 = vtanh.f32 %v2482_v43  ;;  %v2484_v44 = vpop.eup %2483 }
 0x133   : > { %2489 = vtanh.f32 %v2484_v44  ;;  %v1219_v44 = vadd.f32 %v2716_v16, %v1074_v35 }
 0x13d   : > { %v2745_v48 = vpop.eup %2485 }
 0x13e   : > { %v1530_v50 = vrot.slane %v2745_v48, 7 }
 0x13f   : > { %v2748_v52 = vpop.eup %2487  ;;  %v1341_v53 = vpop.f32.mrf.mxu0 }
 0x140   : > { %v1342_v54 = vadd.f32 %v1341_v53, %v1098_v47  ;;  %v1382_v55 = vpop.f32.mrf.mxu1  ;;  %1531 = vrot.lane.b32.xlu1 %v1530_v50, %s2605_s16  ;;  %v1537_v56 = vrot.slane %v2748_v52, 5  ;;  %v2752_v61 = vpop.eup %2489 }
 0x141   : > { %v1383_v57 = vadd.f32 %v1382_v55, %v1106_v49  ;;  %v1343_v58 = vpop.f32.mrf.mxu0  ;;  %v1544_v3 = vrot.slane %v2752_v61, 3 }
 0x142   : > { %2491 = vtanh.f32 %v1342_v54  ;;  %v1344_v59 = vadd.f32 %v1343_v58, %v1102_v51  ;;  %v1384_v60 = vpop.f32.mrf.mxu1 }
 0x143   : > { %2493 = vtanh.f32 %v1383_v57  ;;  %v1345_v62 = vpop.f32.mrf.mxu0  ;;  %v1385_v24 = vadd.f32 %v1384_v60, %v1110_v20  ;;  %v1831_v20 = vld [vmem:[%s2983_s4] sm:$0xff] }
 0x144   : > { %v1386_v63 = vpop.f32.mrf.mxu1  ;;  %1538 = vrot.lane.b32.xlu1 %v1537_v56, %s2605_s16  ;;  %2495 = vtanh.f32 %v1344_v59 }
 0x145   : > { %v1346_v1 = vpop.f32.mrf.mxu0 }
 0x146   : > { %v1387_v2 = vpop.f32.mrf.mxu1  ;;  %v1657_v1 = vld [vmem:[%s2982_s3] sm:$0xff] }
 0x147   : > { %2406 = vmatprep.mubr.msk.f32.mxu0 %vm1669_vm0, %v1657_v1 }
 0x148   : > { %1545 = vrot.lane.b32.xlu1 %v1544_v3, %s2605_s16 }
 0x14f   : > { %v2492_v4 = vpop.eup %2491 }
 0x150   : > { %v2494_v5 = vpop.eup %2493  ;;  %2497 = vtanh.f32 %v2492_v4 }
 0x151   : > { %2499 = vtanh.f32 %v2494_v5  ;;  %v2496_v6 = vpop.eup %2495 }
 0x152   : > { %2501 = vtanh.f32 %v2496_v6 }
 0x153   : > { %2503 = vtanh.f32 %v1180_v15  ;;  %v1833_v15 = vld [vmem:[%s2983_s4 + $0x10] sm:$0xff] }
 0x15d   : > { %v2761_v14 = vpop.eup %2497 }
 0x15e   : > { %v1577_v21 = vrot.slane %v2761_v14, 7  ;;  %v2770_v26 = vpop.eup %2499 }
 0x15f   : > { %v1423_v28 = vpop.f32.mrf.mxu0  ;;  %v1464_v30 = vpop.f32.mrf.mxu1  ;;  %v1591_v9 = vrot.slane %v2770_v26, 3 }
 0x160   : > { %v1424_v23 = vadd.f32 %v1423_v28, %v1114_v13  ;;  %1578 = vrot.lane.b32.xlu0 %v1577_v21, %s2605_s16  ;;  %v1465_v31 = vadd.f32 %v1464_v30, %v1122_v19  ;;  %v2775_v25 = vpop.eup %2501  ;;  %v1832_v19 = vld [vmem:[%s2983_s4 + $0x8] sm:$0xff]  ;;  %v1535_v28 = vrot.slane %v2748_v52, 6  ;;  %v1542_v30 = vrot.slane %v2752_v61, 4 }
 0x161   : > { %v1425_v32 = vpop.f32.mrf.mxu0  ;;  %v1466_v34 = vpop.f32.mrf.mxu1  ;;  %v1584_v43 = vrot.slane %v2775_v25, 5  ;;  %v1582_v61 = vrot.slane %v2775_v25, 6 }
 0x162   : > { %2505 = vtanh.f32 %v1424_v23  ;;  %v1426_v33 = vadd.f32 %v1425_v32, %v1118_v22  ;;  %v1467_v36 = vadd.f32 %v1466_v34, %v1126_v29  ;;  %v2504_v46 = vpop.eup %2503 }
 0x163   : > { %2507 = vtanh.f32 %v1465_v31  ;;  %v1427_v38 = vpop.f32.mrf.mxu0  ;;  %v1468_v39 = vpop.f32.mrf.mxu1 }
 0x164   : > { %2509 = vtanh.f32 %v1426_v33  ;;  %1592 = vrot.lane.b32.xlu0 %v1591_v9, %s2605_s16 }
 0x165   : > { %v1428_v40 = vpop.f32.mrf.mxu0  ;;  %2511 = vtanh.f32 %v1385_v24  ;;  %v1469_v42 = vpop.f32.mrf.mxu1 }
 0x166   : > { %2513 = vtanh.f32 %v1467_v36  ;;  %v1589_v36 = vrot.slane %v2770_v26, 4 }
 0x167   : > { %2515 = vtanh.f32 %v1303_v41 }
 0x168   : > { %1585 = vrot.lane.b32.xlu0 %v1584_v43, %s2605_s16  ;;  %2517 = vtanh.f32 %v1219_v44 }
 0x169   : > { %2519 = vtanh.f32 %v1221_v45 }
 0x16f   : > { %v2506_v47 = vpop.eup %2505 }
 0x170   : > { %v2508_v49 = vpop.eup %2507  ;;  %2521 = vtanh.f32 %v2506_v47 }
 0x171   : > { %v2510_v37 = vpop.eup %2509  ;;  %2523 = vtanh.f32 %v2508_v49 }
 0x172   : > { %2525 = vtanh.f32 %v2504_v46  ;;  %v2512_v50 = vpop.eup %2511 }
 0x173   : > { %2527 = vtanh.f32 %v2510_v37  ;;  %v2514_v16 = vpop.eup %2513 }
 0x174   : > { %2529 = vtanh.f32 %v2512_v50  ;;  %v2516_v12 = vpop.eup %2515 }
 0x175   : > { %2531 = vtanh.f32 %v2514_v16  ;;  %v2518_v51 = vpop.eup %2517 }
 0x176   : > { %2533 = vtanh.f32 %v2516_v12  ;;  %v2520_v53 = vpop.eup %2519 }
 0x177   : > { %2535 = vtanh.f32 %v2518_v51 }
 0x178   : > { %2537 = vtanh.f32 %v2520_v53 }
 0x17d   : > { %v2785_v54 = vpop.eup %2521 }
 0x17e   : > { %v2787_v11 = vpop.eup %2523  ;;  %v1603_v55 = vrot.slane %v2785_v54, 7 }
 0x17f   : > { %v2790_v56 = vpop.eup %2525  ;;  %v1617_v57 = vrot.slane %v2787_v11, 3  ;;  %v1615_v50 = vrot.slane %v2787_v11, 4 }
 0x180   : > { %v2793_v58 = vpop.eup %2527  ;;  %1604 = vrot.lane.b32.xlu0 %v1603_v55, %s2605_s16  ;;  %v1511_v59 = vrot.slane %v2790_v56, 5  ;;  %v1509_v25 = vrot.slane %v2790_v56, 6 }
 0x181   : > { %1618 = vrot.lane.b32.xlu1 %v1617_v57, %s2605_s16  ;;  %v2530_v60 = vpop.eup %2529  ;;  %v1610_v62 = vrot.slane %v2793_v58, 5  ;;  %v1608_v46 = vrot.slane %v2793_v58, 6 }
 0x182   : > { %v2799_v63 = vpop.eup %2531  ;;  %v1598_v2 = vrot.slane %v2530_v60, 1  ;;  %v1596_v42 = vrot.slane %v2530_v60, 2 }
 0x183   : > { %v2534_v3 = vpop.eup %2533  ;;  %v1624_v4 = vrot.slane %v2799_v63, 1  ;;  %v1622_v55 = vrot.slane %v2799_v63, 2 }
 0x184   : > { %1512 = vrot.lane.b32.xlu0 %v1511_v59, %s2605_s16  ;;  %v2808_v5 = vpop.eup %2535  ;;  %v1551_v6 = vrot.slane %v2534_v3, 1  ;;  %v1549_v24 = vrot.slane %v2534_v3, 2 }
 0x185   : > { %1611 = vrot.lane.b32.xlu1 %v1610_v62, %s2605_s16  ;;  %v1518_v7 = vrot.slane %v2808_v5, 3  ;;  %v2813_v10 = vpop.eup %2537  ;;  %v1516_v37 = vrot.slane %v2808_v5, 4 }
 0x186   : > { %v1525_v13 = vrot.slane %v2813_v10, 1  ;;  %v1523_v3 = vrot.slane %v2813_v10, 2  ;;  %v1660_v10 = vld [vmem:[%s2982_s3 + $0x18] sm:$0xff] }
 0x188   : > { %1599 = vrot.lane.b32.xlu0 %v1598_v2, %s2605_s16 }
 0x189   : > { %1625 = vrot.lane.b32.xlu1 %v1624_v4, %s2605_s16 }
 0x18c   : > { %1552 = vrot.lane.b32.xlu0 %v1551_v6, %s2605_s16 }
 0x18d   : > { %1519 = vrot.lane.b32.xlu1 %v1518_v7, %s2605_s16  ;;  %v1658_v7 = vld [vmem:[%s2982_s3 + $0x8] sm:$0xff] }
 0x190   : > { %1852 = vperm.xlu0 %2473, %v1834_v18   ;;  %v1662_v18 = vld [vmem:[%s2982_s3 + $0x28] sm:$0xff] }
 0x191   : > { %1526 = vrot.lane.b32.xlu1 %v1525_v13, %s2605_s16  ;;  %v1659_v13 = vld [vmem:[%s2982_s3 + $0x10] sm:$0xff] }
 0x192   : > { %v1506_v33 = vpop.permute.xlu0 %1505 }
 0x194   : > { %1837 = vperm.xlu0 %2473, %v1831_v20   ;;  %v1664_v20 = vld [vmem:[%s2982_s3 + $0x38] sm:$0xff] }
 0x195   : > { %1847 = vperm.xlu1 %2474, %v1833_v15   ;;  %v1661_v15 = vld [vmem:[%s2982_s3 + $0x20] sm:$0xff] }
 0x199   : > { %1842 = vperm.xlu1 %2474, %v1832_v19   ;;  %v1663_v19 = vld [vmem:[%s2982_s3 + $0x30] sm:$0xff] }
 0x1b2   : > { %v1532_v21 = vpop.permute.xlu1 %1531 }
 0x1b3   : > { %v1569_v22 = vsel %vm1555_vm1, %v2745_v48, %v1532_v21  ;;  %v1665_v21 = vld [vmem:[%s2982_s3 + $0x40] sm:$0xff] }
 0x1b4   : > { %v1570_v29 = vsel %vm1557_vm3, %v1569_v22, %v1535_v28  ;;  %v1666_v22 = vld [vmem:[%s2982_s3 + $0x48] sm:$0xff]  ;;  %v1667_v28 = vld [vmem:[%s2982_s3 + $0x50] sm:$0xff] }
 0x1b6   : > { %v1539_v23 = vpop.permute.xlu1 %1538 }
 0x1b7   : > { %v1571_v17 = vsel %vm1559_vm2, %v1570_v29, %v1539_v23  ;;  %v1668_v29 = vld [vmem:[%s2982_s3 + $0x58] sm:$0xff]  ;;  %v1914_v23 = vld [vmem:[%s2984_s5] sm:$0xff] }
 0x1b8   : > { %v1572_v31 = vsel %vm1561_vm4, %v1571_v17, %v1542_v30  ;;  %2432 = vmatprep.mubr.msk.f32.mxu1 %vm1669_vm0, %v1914_v23 }
 0x1ba   : > { %v1546_v32 = vpop.permute.xlu1 %1545 }
 0x1bb   : > { %v1573_v48 = vsel %vm1563_vm5, %v1572_v31, %v1546_v32 }
 0x1bc   : > { %v1574_v52 = vsel %vm1565_vm6, %v1573_v48, %v1549_v24 }
 0x1d2   : > { %v1579_v34 = vpop.permute.xlu0 %1578 }
 0x1d3   : > { %v1628_v35 = vsel %vm1555_vm1, %v2761_v14, %v1579_v34  ;;  %v1556_v14 = vsel %vm1555_vm1, %v2728_v27, %v1506_v33 }
 0x1d4   : > { %v1629_v38 = vsel %vm1557_vm3, %v1628_v35, %v1582_v61  ;;  %v1558_v47 = vsel %vm1557_vm3, %v1556_v14, %v1509_v25  ;;  %v1915_v25 = vld [vmem:[%s2984_s5 + $0x8] sm:$0x7f] }
 0x1d6   : > { %v1593_v9 = vpop.permute.xlu0 %1592 }
 0x1da   : > { %v1586_v39 = vpop.permute.xlu0 %1585 }
 0x1db   : > { %v1630_v40 = vsel %vm1559_vm2, %v1629_v38, %v1586_v39 }
 0x1dc   : > { %v1631_v41 = vsel %vm1561_vm4, %v1630_v40, %v1589_v36 }
 0x1dd   : > { %v1632_v43 = vsel %vm1563_vm5, %v1631_v41, %v1593_v9 }
 0x1de   : > { %v1633_v44 = vsel %vm1565_vm6, %v1632_v43, %v1596_v42 }
 0x1f2   : > { %v1605_v0 = vpop.permute.xlu0 %1604 }
 0x1f3   : > { %v1619_v45 = vpop.permute.xlu1 %1618  ;;  %v1635_v26 = vsel %vm1555_vm1, %v2785_v54, %v1605_v0 }
 0x1f4   : > { %v1636_v12 = vsel %vm1557_vm3, %v1635_v26, %v1608_v46  ;;  %v2090_v46 = vld [vmem:[%s2985_s6] sm:$0x7] }
 0x1f6   : > { %v1513_v49 = vpop.permute.xlu0 %1512 }
 0x1f7   : > { %v1612_v16 = vpop.permute.xlu1 %1611  ;;  %v1560_v27 = vsel %vm1559_vm2, %v1558_v47, %v1513_v49 }
 0x1f8   : > { %v1637_v51 = vsel %vm1559_vm2, %v1636_v12, %v1612_v16  ;;  %v1562_v53 = vsel %vm1561_vm4, %v1560_v27, %v1516_v37 }
 0x1f9   : > { %v1638_v54 = vsel %vm1561_vm4, %v1637_v51, %v1615_v50 }
 0x1fa   : > { %v1600_v56 = vpop.permute.xlu0 %1599  ;;  %v1639_v57 = vsel %vm1563_vm5, %v1638_v54, %v1619_v45 }
 0x1fb   : > { %v1626_v58 = vpop.permute.xlu1 %1625  ;;  %v1640_v11 = vsel %vm1565_vm6, %v1639_v57, %v1622_v55  ;;  %v1634_v60 = vsel %vm1567_vm7, %v1633_v44, %v1600_v56  ;;  %v1643_v57 = vand.u32 127, %v1063_v8 }
 0x1fc   : > { %v1641_v59 = vsel %vm1567_vm7, %v1640_v11, %v1626_v58 }
 0x1fd   : > { %2398 = vmatprep.subr.mxu0 %v1641_v59 }
 0x1fe   : > { %2399 = vmatpush3.msra.mxu0 %v1641_v59  ;;  %v1553_v62 = vpop.permute.xlu0 %1552 }
 0x1ff   : > { %v1520_v1 = vpop.permute.xlu1 %1519  ;;  %2400 = vmatprep.subr.mxu0 %v1634_v60  ;;  %v1575_v2 = vsel %vm1567_vm7, %v1574_v52, %v1553_v62 }
 0x200   : > { %v1564_v63 = vsel %vm1563_vm5, %v1562_v53, %v1520_v1  ;;  %2401 = vmatpush3.msra.mxu0 %v1634_v60 }
 0x201   : > { %2402 = vmatprep.subr.mxu0 %v1575_v2  ;;  %v1566_v4 = vsel %vm1565_vm6, %v1564_v63, %v1523_v3 }
 0x202   : > { %2403 = vmatpush3.msra.mxu0 %v1575_v2  ;;  %v1648_v2 = vand.u32 63, %v1643_v57 }
 0x203   : > { %v1527_v5 = vpop.permute.xlu1 %1526 }
 0x204   : > { %v1568_v6 = vsel %vm1567_vm7, %v1566_v4, %v1527_v5  ;;  %vm2954_vm9 = vcmp.eq.s32.totalorder %v1648_v2, 63 }
 0x205   : > { %2404 = vmatprep.subr.mxu0 %v1568_v6  ;;  %vm2354_vm10 = vmneg %vm2954_vm9 }
 0x206   : > { %2405 = vmatpush3.msra.mxu0 %v1568_v6 }
 0x207   : > { %2407 = vmatmul.mubr.msk.f32.vlgmr.msra.gmra.mxu0 %vm1669_vm0, %v1658_v7 }
 0x208   : > { %2409 = vmatprep.mubr.msk.f32.mxu0 %vm1669_vm0, %v1659_v13 }
 0x20b   : > { %2410 = vmatmul.mubr.msk.f32.gmra.mxu0 %vm1669_vm0, %v1660_v10  ;;  %v1853_v31 = vpop.permute.xlu0 %1852 }
 0x20c   : > { %2412 = vmatprep.mubr.msk.f32.mxu0 %vm1669_vm0, %v1661_v15 }
 0x20f   : > { %2413 = vmatmul.mubr.msk.f32.gmra.mxu0 %vm1669_vm0, %v1662_v18  ;;  %v2925_v34 = vpop.permute.xlu0 %1837 }
 0x210   : > { %2415 = vmatprep.mubr.msk.f32.mxu0 %vm1669_vm0, %v1663_v19  ;;  %v2921_v30 = vpop.permute.xlu1 %1847 }
 0x213   : > { %2416 = vmatmul.mubr.msk.f32.gmra.mxu0 %vm1669_vm0, %v1664_v20 }
 0x214   : > { %2418 = vmatprep.mubr.msk.f32.mxu0 %vm1669_vm0, %v1665_v21  ;;  %v2923_v48 = vpop.permute.xlu1 %1842 }
 0x217   : > { %2419 = vmatmul.mubr.msk.f32.gmra.mxu0 %vm1669_vm0, %v1666_v22 }
 0x218   : > { %2421 = vmatprep.mubr.msk.f32.mxu0 %vm1669_vm0, %v1667_v28 }
 0x21b   : > { %2422 = vmatmul.mubr.msk.f32.gmra.mxu0 %vm1669_vm0, %v1668_v29 }
 0x2c7   : > { %v2408_v17 = vpop.f32.mrf.mxu0 }
 0x2c8   : > { %v1856_v35 = vadd.f32 %v2408_v17, %v2923_v48 }
 0x2c9   : > { %v1772_v32 = vpop.f32.mrf.mxu0 }
 0x2ca   : > { %v1855_v36 = vadd.f32 %v2925_v34, %v1772_v32 }
 0x2cb   : > { %v2411_v24 = vpop.f32.mrf.mxu0 }
 0x2cc   : > { %v1858_v52 = vadd.f32 %v2411_v24, %v1853_v31 }
 0x2cd   : > { %v1782_v33 = vpop.f32.mrf.mxu0 }
 0x2ce   : > { %2539 = vtanh.f32 %v1858_v52  ;;  %v1857_v9 = vadd.f32 %v2921_v30, %v1782_v33 }
 0x2cf   : > { %v2414_v61 = vpop.f32.mrf.mxu0 }
 0x2d0   : > { %2541 = vtanh.f32 %v1857_v9 }
 0x2d1   : > { %v1792_v38 = vpop.f32.mrf.mxu0  ;;  %2543 = vtanh.f32 %v1856_v35 }
 0x2d2   : > { %2545 = vtanh.f32 %v1855_v36 }
 0x2d3   : > { %v2417_v39 = vpop.f32.mrf.mxu0 }
 0x2d5   : > { %v1802_v40 = vpop.f32.mrf.mxu0 }
 0x2d7   : > { %v2420_v41 = vpop.f32.mrf.mxu0 }
 0x2d8   : > { %1881 = vrot.lane.b32.xlu0 %v2420_v41, %s2606_s11  ;;  %1869 = vrot.lane.b32.xlu1 %v2420_v41, %s2607_s12 }
 0x2d9   : > { %v1812_v42 = vpop.f32.mrf.mxu0 }
 0x2db   : > { %v2540_v43 = vpop.eup %2539  ;;  %v2423_v44 = vpop.f32.mrf.mxu0 }
 0x2dc   : > { %1885 = vrot.lane.b32.xlu0 %v2423_v44, %s2606_s11  ;;  %1873 = vrot.lane.b32.xlu1 %v2423_v44, %s2607_s12 }
 0x2dd   : > { %v2542_v0 = vpop.eup %2541  ;;  %2424 = vmatprep.subr.mxu1 %v2540_v43  ;;  %v1822_v14 = vpop.f32.mrf.mxu0 }
 0x2de   : > { %2425 = vmatpush3.msra.mxu1 %v2540_v43  ;;  %v2544_v45 = vpop.eup %2543 }
 0x2df   : > { %2426 = vmatprep.subr.mxu1 %v2542_v0  ;;  %v2546_v26 = vpop.eup %2545 }
 0x2e0   : > { %2427 = vmatpush3.msra.mxu1 %v2542_v0  ;;  %1883 = vrot.lane.b32.xlu0 %v1822_v14, %s2606_s11 }
 0x2e1   : > { %1871 = vrot.lane.b32.xlu1 %v1822_v14, %s2607_s12  ;;  %2428 = vmatprep.subr.mxu1 %v2544_v45 }
 0x2e2   : > { %2429 = vmatpush3.msra.mxu1 %v2544_v45 }
 0x2e3   : > { %2430 = vmatprep.subr.mxu1 %v2546_v26 }
 0x2e4   : > { %2431 = vmatpush3.msra.mxu1 %v2546_v26  ;;  %1879 = vrot.lane.b32.xlu0 %v1812_v42, %s2606_s11 }
 0x2e5   : > { %1867 = vrot.lane.b32.xlu1 %v1812_v42, %s2607_s12  ;;  %2433 = vmatmul.mubr.msk.f32.vlgmr.msra.gmra.mxu1 %vm1669_vm0, %v1915_v25 }
 0x2e6   : > { %2443 = vmatprep.mubr.msk.f32.mxu1 %vm1669_vm0, %v1914_v23 }
 0x2e9   : > { %2097 = vperm.xlu1 %2474, %v2090_v46  }
 0x34a   : > { %v1870_v47 = vpop.permute.xlu1 %1869  ;;  %v1882_v49 = vpop.permute.xlu0 %1881 }
 0x34b   : > { %v1893_v12 = vsel %vm1891_vm8, %v1870_v47, %v1882_v49 }
 0x34c   : > { %v1897_v54 = vadd.f32 %v2414_v61, %v1893_v12 }
 0x34e   : > { %v1874_v37 = vpop.permute.xlu1 %1873  ;;  %v1886_v50 = vpop.permute.xlu0 %1885  ;;  %v1901_v59 = vadd.f32 %v1897_v54, %v2923_v48 }
 0x34f   : > { %v1895_v16 = vsel %vm1891_vm8, %v1874_v37, %v1886_v50 }
 0x350   : > { %v1899_v27 = vadd.f32 %v2417_v39, %v1895_v16 }
 0x352   : > { %v1903_v51 = vadd.f32 %v1899_v27, %v1853_v31  ;;  %v1884_v53 = vpop.permute.xlu0 %1883 }
 0x353   : > { %v1872_v55 = vpop.permute.xlu1 %1871 }
 0x354   : > { %2547 = vtanh.f32 %v1903_v51  ;;  %v1894_v56 = vsel %vm1891_vm8, %v1872_v55, %v1884_v53 }
 0x355   : > { %v1898_v58 = vadd.f32 %v1894_v56, %v1802_v40 }
 0x356   : > { %v1880_v11 = vpop.permute.xlu0 %1879 }
 0x357   : > { %v1902_v60 = vadd.f32 %v1898_v58, %v2921_v30  ;;  %v1868_v62 = vpop.permute.xlu1 %1867 }
 0x358   : > { %v1892_v1 = vsel %vm1891_vm8, %v1868_v62, %v1880_v11 }
 0x359   : > { %2549 = vtanh.f32 %v1902_v60  ;;  %v1896_v3 = vadd.f32 %v1892_v1, %v1792_v38 }
 0x35a   : > { %2551 = vtanh.f32 %v1901_v59 }
 0x35b   : > { %v1900_v63 = vadd.f32 %v1896_v3, %v2925_v34 }
 0x35d   : > { %2553 = vtanh.f32 %v1900_v63 }
 0x361   : > { %v2548_v8 = vpop.eup %2547 }
 0x362   : > { %2435 = vmatprep.subr.msk.mxu1 %vm2354_vm10, %v2548_v8 }
 0x363   : > { %2436 = vmatpush3.msk.msra.mxu1 %vm2354_vm10, %v2548_v8 }
 0x364   : > { %v2098_v15 = vpop.permute.xlu1 %2097 }
 0x365   : > { %v2100_v28 = vrot.slane %v2098_v15, 5 }
 0x366   : > { %v2550_v5 = vpop.eup %2549 }
 0x367   : > { %2437 = vmatprep.subr.msk.mxu1 %vm2354_vm10, %v2550_v5  ;;  %v2552_v6 = vpop.eup %2551 }
 0x368   : > { %2438 = vmatpush3.msk.msra.mxu1 %vm2354_vm10, %v2550_v5 }
 0x369   : > { %2439 = vmatprep.subr.msk.mxu1 %vm2354_vm10, %v2552_v6 }
 0x36a   : > { %v2554_v7 = vpop.eup %2553  ;;  %2440 = vmatpush3.msk.msra.mxu1 %vm2354_vm10, %v2552_v6 }
 0x36b   : > { %2441 = vmatprep.subr.msk.mxu1 %vm2354_vm10, %v2554_v7 }
 0x36c   : > { %2442 = vmatpush3.msk.msra.mxu1 %vm2354_vm10, %v2554_v7 }
 0x36d   : > { %2444 = vmatmul.mubr.msk.f32.vlgmr.msra.gmra.mxu1 %vm1669_vm0, %v1915_v25 }
 0x3a5   : > { %v2434_v13 = vpop.f32.mrf.mxu1 }
 0x3a6   : > { %v2108_v22 = vrot.slane %v2434_v13, 6  ;;  %v2132_v48 = vrot.slane %v2434_v13, 4 }
 0x3a7   : > { %v1988_v10 = vpop.f32.mrf.mxu1 }
 0x3a8   : > { %2085 = vrot.lane.b32.xlu1 %v1988_v10, %s2606_s11  ;;  %2082 = vrot.lane.b32.xlu0 %v1988_v10, %s2607_s12  ;;  %v2107_v61 = vrot.slane %v1988_v10, 6 }
 0x3aa   : > { %v2109_v39 = vsel %vm1557_vm3, %v2107_v61, %v2108_v22 }
 0x41a   : > { %v2086_v18 = vpop.permute.xlu1 %2085  ;;  %v2083_v19 = vpop.permute.xlu0 %2082 }
 0x41b   : > { %v2088_v21 = vsel %vm1891_vm8, %v2083_v19, %v2086_v18 }
 0x41c   : > { %v2089_v31 = vsel %vm2954_vm9, 0.0, %v2088_v21 }
 0x42d   : > { %v2445_v20 = vpop.f32.mrf.mxu1 }
 0x42e   : > { %2076 = vrot.lane.b32.xlu1 %v2445_v20, %s2608_s17  ;;  %2073 = vrot.lane.b32.xlu0 %v2445_v20, %s2609_s18  ;;  %v2128_v23 = vrot.slane %v2445_v20, 6 }
 0x42f   : > { %v2063_v29 = vpop.f32.mrf.mxu1 }
 0x430   : > { %v2121_v30 = vadd.f32 %v2108_v22, %v2063_v29  ;;  %v2127_v17 = vrot.slane %v2063_v29, 6  ;;  %v2111_v41 = vadd.f32 %v2109_v39, %v2063_v29 }
 0x432   : > { %v2122_v32 = vadd.f32 %v2121_v30, %v2100_v28  ;;  %v2129_v24 = vsel %vm1557_vm3, %v2127_v17, %v2128_v23 }
 0x433   : > { %v2131_v52 = vadd.f32 %v2129_v24, %v2089_v31 }
 0x434   : > { %2555 = vtanh.f32 %v2122_v32 }
 0x435   : > { %v2134_v33 = vadd.f32 %v2132_v48, %v2131_v52 }
 0x437   : > { %v2135_v34 = vadd.f32 %v2134_v33, %v2098_v15 }
 0x439   : > { %2557 = vtanh.f32 %v2135_v34 }
 0x441   : > { %v2556_v9 = vpop.eup %2555 }
 0x442   : > { %2365 = vst.msk [vmem:[%s287_s22 + $0x5] sm:$0x38] %vm2104_vm11, %v2556_v9 }
 0x446   : > { %v2558_v35 = vpop.eup %2557 }
 0x447   : > { %2366 = vst.msk [vmem:[%s287_s22 + $0xc] sm:$0x7] %vm2118_vm12, %v2558_v35 }
 0x4a0   : > { %v2077_v36 = vpop.permute.xlu1 %2076  ;;  %v2074_v38 = vpop.permute.xlu0 %2073 }
 0x4a1   : > { %v2080_v40 = vsel %vm2079_vm13, %v2074_v38, %v2077_v36 }
 0x4a2   : > { %v2092_v42 = vrot.slane %v2080_v40, 6  ;;  %v2112_v43 = vrot.slane %v2080_v40, 4 }
 0x4a4   : > { %v2094_v44 = vadd.f32 %v2092_v42, %v1988_v10  ;;  %v2114_v0 = vadd.f32 %v2112_v43, %v2111_v41 }
 0x4a6   : > { %v2102_v14 = vadd.f32 %v2100_v28, %v2094_v44  ;;  %v2115_v45 = vadd.f32 %v2114_v0, %v2098_v15 }
 0x4a8   : > { %2559 = vtanh.f32 %v2102_v14 }
 0x4a9   : > { %2561 = vtanh.f32 %v2115_v45 }
 0x4b5   : > { %v2560_v26 = vpop.eup %2559 }
 0x4b6   : > { %v2562_v25 = vpop.eup %2561  ;;  %2105 = vst.msk [vmem:[%s287_s22 - $0x3] sm:$0x38] %vm2104_vm11, %v2560_v26 }
 0x4b7   : > { %2364 = vst.msk [vmem:[%s287_s22 + $0x4] sm:$0x7] %vm2118_vm12, %v2562_v25 }
 0x4b8 PF: > { %s18_s24 = sadd.s32 1, %s2599_s24  }
 0x4b9   : > { %p15_p1 = scmp.ge.s32.totalorder %s18_s24, 4  }
 0x4bb   :  { %17 = sbr.rel (!%p15_p1) target bundleno = 1 (0x1), region = 86 }
 0x4c0   :  { %2160 = vsyncpa [#allocation3], 1 }
 0x4c1   :  { %2162 = vsyncpa [#allocation3 + $0x1], 1 }

</bundles_post_ra>
